<compile_context>
chip_gen: v6e
topology: v6e:2x2x1
jax: 0.10.0
libtpu: 0.0.40
codegen_flags: <defaults>
</compile_context>

<pallas_src>
import functools
import math

import jax
import jax.numpy as jnp
from jax.experimental import pallas as pl
from jax.experimental.pallas import tpu as pltpu


# --------------------------------------------------------------------------- #
# Fused encoder kernel: grid = (batch_chunks, num_layers)
# --------------------------------------------------------------------------- #
def fused_encoder_kernel(bias_ref,                        # (Bb, 1, S) f32 additive key mask (0 / -1e6)
                         x_ref,                           # (Bb*S, H)  f32 input activations
                         wq_ref, wk_ref, wv_ref, wo_ref,  # (1, H, H)  bf16 (Wq pre-scaled by 1/sqrt(dh))
                         g1_ref, b1_ref,                  # (1, 1, H)  f32 LayerNorm 1
                         w1_ref, bb1_ref,                 # (1, H, F) bf16 / (1, 1, F) f32
                         w2_ref, bb2_ref,                 # (1, F, H) bf16 / (1, 1, H) f32
                         g2_ref, b2_ref,                  # (1, 1, H)  f32 LayerNorm 2
                         out_ref,                         # (Bb*S, H)  f32
                         y_scratch,                       # (Bb*S, H)  f32 VMEM (resident across layers)
                         *, num_heads, batch_block, seq_len):
    l = pl.program_id(1)
    num_layers = pl.num_programs(1)
    Bb, S, nh = batch_block, seq_len, num_heads
    M, H = x_ref.shape
    dh = H // nh
    bf16, f32 = jnp.bfloat16, jnp.float32

    # First layer of each batch chunk: seed the resident activation from HBM input.
    @pl.when(l == 0)
    def _():
        y_scratch[...] = x_ref[...]

    x = y_scratch[...]                                    # (M, H) f32, carried across layers
    xb = x.astype(bf16)

    # ---------------- multi-head self-attention ---------------- #
    # bf16 MXU inputs, f32 accumulation; 1/sqrt(dh) already folded into Wq.
    q = jnp.dot(xb, wq_ref[0], preferred_element_type=f32)
    k = jnp.dot(xb, wk_ref[0], preferred_element_type=f32)
    v = jnp.dot(xb, wv_ref[0], preferred_element_type=f32)

    def rows3d(t):                                        # (M, H) -> (Bb, S, H)
        if S % 8 == 0 or Bb == 1:
            return t.reshape(Bb, S, H)                    # leading-axis split, lane dim unchanged
        return jnp.concatenate([t[r * S:(r + 1) * S][None] for r in range(Bb)], axis=0)

    def merge_rows(t3):                                   # (Bb, S, d) -> (Bb*S, d)
        if S % 8 == 0 or Bb == 1:
            return t3.reshape(Bb * S, t3.shape[-1])
        return jnp.concatenate([t3[r] for r in range(Bb)], axis=0)

    def heads_to_batch(t):                                # (M, H) -> (nh*Bb, S, dh) bf16
        t3 = rows3d(t)
        if nh == 1:
            return t3.astype(bf16)
        return jnp.concatenate(
            [t3[:, :, h * dh:(h + 1) * dh] for h in range(nh)], axis=0).astype(bf16)

    q_all, k_all, v_all = heads_to_batch(q), heads_to_batch(k), heads_to_batch(v)

    # Additive key mask (0 valid / -1e6 invalid), broadcast over heads & queries.
    bias = bias_ref[...]                                  # (Bb, 1, S) f32
    bias_all = bias if nh == 1 else jnp.concatenate([bias] * nh, axis=0)

    scores = jnp.einsum('bqd,bkd->bqk', q_all, k_all,
                        preferred_element_type=f32) + bias_all   # (nh*Bb, S, S)

    # softmax in f32; denominator via approximate EUP reciprocal (~1e-3 rel err).
    m = jnp.max(scores, axis=-1, keepdims=True)
    e = jnp.exp(scores - m)
    attn = e * pl.reciprocal(jnp.sum(e, axis=-1, keepdims=True), approx=True)

    o_all = jnp.einsum('bqk,bkd->bqd', attn.astype(bf16), v_all,
                       preferred_element_type=f32)        # (nh*Bb, S, dh)

    # transpose_output: one lane slice per head, single lane concat -> (M, H).
    o_heads = [merge_rows(o_all[h * Bb:(h + 1) * Bb]) for h in range(nh)]
    concat = o_heads[0] if nh == 1 else jnp.concatenate(o_heads, axis=-1)

    attn_out = jnp.dot(concat.astype(bf16), wo_ref[0], preferred_element_type=f32)

    def layer_norm(z, g, beta):
        mu = jnp.mean(z, axis=-1, keepdims=True)
        var = jnp.mean((z - mu) ** 2, axis=-1, keepdims=True)
        return (z - mu) * jax.lax.rsqrt(var + 1e-5) * g + beta

    # AddNorm 1.  TODO(synk): dropout is identity (inference / p = 0).
    y = layer_norm(x + attn_out, g1_ref[0], b1_ref[0])

    # PositionWiseFFN (bf16 MXU inputs, f32 accumulation + bias/ReLU in f32).
    h1 = jnp.maximum(
        jnp.dot(y.astype(bf16), w1_ref[0], preferred_element_type=f32) + bb1_ref[0],
        0.0)
    ffn = jnp.dot(h1.astype(bf16), w2_ref[0], preferred_element_type=f32) + bb2_ref[0]

    # AddNorm 2.
    out = layer_norm(y + ffn, g2_ref[0], b2_ref[0])
    y_scratch[...] = out                                  # carry to next layer

    @pl.when(l == num_layers - 1)
    def _():
        out_ref[...] = out.astype(out_ref.dtype)


# --------------------------------------------------------------------------- #
# Sizing helpers
# --------------------------------------------------------------------------- #
def _physical_vmem_bytes():
    try:
        return int(pltpu.get_tpu_info().vmem_capacity_bytes)
    except Exception:
        return 64 << 20          # conservative floor (v7x per-TC VMEM)


def _chunk_vmem_bytes(M, H, F, num_heads, S, Bb, ffn_buffers=2):
    """Generous per-chunk VMEM estimate: streamed weights, pipelined I/O blocks,
    resident activation scratch and peak kernel temporaries (incl. the (M,F) FFN
    intermediate and bf16 copies)."""
    dh = H // num_heads
    attn_w = 2 * 4 * H * H                         # Wq/Wk/Wv/Wo, bf16
    ffn_w = 2 * 2 * H * F                          # W1/W2, bf16
    vecs = 4 * (5 * H + F)                         # LN scales/shifts + FFN biases, f32
    weights = 2 * (attn_w + vecs) + ffn_buffers * ffn_w
    io = 2 * (4 * M * H) * 2 + 2 * (4 * Bb * S)    # x-in + out blocks + bias, dbl-buffered
    scratch = 4 * M * H                            # resident activation carry
    tmp = 4 * M * H * 4                            # live f32 activations
    tmp += 2 * M * H * 3                           # bf16 copies (x, stacked qkv, concat)
    tmp += num_heads * Bb * S * S * (4 + 4 + 2)    # scores f32, exp f32, attn bf16
    tmp += num_heads * Bb * S * dh * 4             # attention output stack
    tmp += M * F * (4 + 2)                         # FFN hidden f32 + bf16
    return weights + io + scratch + tmp


def _choose_batch_block(B, S, H, F, num_heads, budget):
    """Fold batch rows into the matmul M dimension.  Weight-streaming break-even
    is ~240 rows (v5e) / ~640 (v6e) / ~310 (v7x); target >= 2x that, VMEM permitting."""
    target_m = 1024
    min_chunk_m = 512
    cands = [d for d in range(1, B + 1)
             if B % d == 0 and (d == B or (d * S) % 8 == 0)]
    feasible = [d for d in cands
                if _chunk_vmem_bytes(d * S, H, F, num_heads, S, d) <= budget]
    if not feasible:
        feasible = [min(cands)]
    reach = [d for d in feasible if d * S >= target_m]
    bb = min(reach) if reach else max(feasible)
    # Prefer >= 2 batch chunks (so the "parallel" axis can use both v7x TensorCores)
    # as long as each chunk still amortizes weight streaming.
    if bb == B and B > 1:
        alt = [d for d in feasible if d < B and d * S >= min_chunk_m]
        if alt:
            bb = max(alt)
    return bb


def positional_encoding(S, H):
    pos = jnp.arange(S, dtype=jnp.float32)[:, None]
    div = jnp.power(10000.0, jnp.arange(0, H, 2, dtype=jnp.float32) / H)
    angles = pos / div                                    # (S, H//2)
    P = jnp.zeros((S, H), jnp.float32)
    P = P.at[:, 0::2].set(jnp.sin(angles))
    P = P.at[:, 1::2].set(jnp.cos(angles))
    return P


# --------------------------------------------------------------------------- #
# Wrapper
# --------------------------------------------------------------------------- #
def transformer_encoder(tokens, valid_lens, params, num_heads, batch_block=None):
    emb = params["embedding"][tokens]                     # (B, S, H) gather — JAX glue
    B, S, H = emb.shape
    L = params["wq"].shape[0]
    F = params["w1"].shape[-1]
    assert H % num_heads == 0
    dh = H // num_heads

    x = (emb * math.sqrt(H) + positional_encoding(S, H)[None]).astype(jnp.float32)
    # TODO(synk): dropout layers are identity (inference / p = 0).

    phys = _physical_vmem_bytes()
    budget = phys - (12 << 20)                            # leave headroom below physical VMEM
    Bb = batch_block if batch_block is not None else _choose_batch_block(
        B, S, H, F, num_heads, budget)
    assert B % Bb == 0 and (Bb == B or (Bb * S) % 8 == 0)
    M = Bb * S

    bf16 = jnp.bfloat16
    scale = 1.0 / math.sqrt(dh)
    wq = (params["wq"] * scale).astype(bf16)              # 1/sqrt(dh) folded into Wq
    wk = params["wk"].astype(bf16)
    wv = params["wv"].astype(bf16)
    wo = params["wo"].astype(bf16)
    w1 = params["w1"].astype(bf16)
    w2 = params["w2"].astype(bf16)
    g1 = params["g1"][:, None, :]                         # (L, 1, H) f32
    b1 = params["b1"][:, None, :]
    bb1 = params["bb1"][:, None, :]                       # (L, 1, F) f32
    bb2 = params["bb2"][:, None, :]
    g2 = params["g2"][:, None, :]
    b2 = params["b2"][:, None, :]

    # Lane-dense flattened activations (B*S, H); additive key-mask bias per row.
    x2 = x.reshape(B * S, H)
    if valid_lens is None:
        bias = jnp.zeros((B, 1, S), jnp.float32)
    else:
        keep = jnp.arange(S)[None, :] < valid_lens[:, None]
        bias = jnp.where(keep, 0.0, -1e6).astype(jnp.float32)[:, None, :]

    # VMEM budget / FFN buffering decision (v7x: 64 MiB may not hold 2x FFN weights).
    est2 = _chunk_vmem_bytes(M, H, F, num_heads, S, Bb, ffn_buffers=2)
    est1 = _chunk_vmem_bytes(M, H, F, num_heads, S, Bb, ffn_buffers=1)
    ffn_pipeline = None
    est = est2
    if est2 > budget and est1 <= budget:
        ffn_pipeline = pl.Buffered(1)                     # single-buffer big FFN weights
        est = est1
    vmem_limit = int(min(budget, max(int(est * 1.25) + (8 << 20), 32 << 20)))

    # NOTE: the layer axis MUST stay innermost and "arbitrary": y_scratch carries the
    # activation across layers and is re-seeded via pl.when(l == 0) per batch chunk.
    grid = (B // Bb, L)

    def wspec(shape, pipeline_mode=None):
        nd = len(shape)
        idx = lambda i, l: (l,) + (0,) * nd
        if pipeline_mode is None:
            return pl.BlockSpec((1,) + shape, idx)
        return pl.BlockSpec((1,) + shape, idx, pipeline_mode=pipeline_mode)

    in_specs = [
        pl.BlockSpec((Bb, 1, S), lambda i, l: (i, 0, 0)),       # additive mask bias
        pl.BlockSpec((M, H), lambda i, l: (i, 0)),              # activations (fetched once per chunk)
        wspec((H, H)), wspec((H, H)), wspec((H, H)), wspec((H, H)),   # Wq Wk Wv Wo
        wspec((1, H)), wspec((1, H)),                           # ln1 gamma/beta
        wspec((H, F), ffn_pipeline), wspec((1, F)),             # ffn dense1 W, b
        wspec((F, H), ffn_pipeline), wspec((1, H)),             # ffn dense2 W, b
        wspec((1, H)), wspec((1, H)),                           # ln2 gamma/beta
    ]
    out_spec = pl.BlockSpec((M, H), lambda i, l: (i, 0))

    kernel = functools.partial(fused_encoder_kernel,
                               num_heads=num_heads, batch_block=Bb, seq_len=S)

    out2 = pl.pallas_call(
        kernel,
        out_shape=jax.ShapeDtypeStruct((B * S, H), jnp.float32),
        grid_spec=pltpu.PrefetchScalarGridSpec(
            num_scalar_prefetch=0,
            grid=grid,
            in_specs=in_specs,
            out_specs=out_spec,
            scratch_shapes=[pltpu.VMEM((M, H), jnp.float32)]),
        compiler_params=pltpu.CompilerParams(
            dimension_semantics=("parallel", "arbitrary"),
            vmem_limit_bytes=vmem_limit),
    )(bias, x2,
      wq, wk, wv, wo,
      g1, b1, w1, bb1, w2, bb2, g2, b2)

    return out2.reshape(B, S, H)


# --------------------------------------------------------------------------- #
# Pure-JAX reference matching the kernel's bf16-at-MXU recipe (silent check)
# --------------------------------------------------------------------------- #
def ref_encoder(tokens, valid_lens, params, num_heads):
    bf = jnp.bfloat16
    f32 = jnp.float32
    emb = params["embedding"][tokens]
    B, S, H = emb.shape
    L = params["wq"].shape[0]
    dh = H // num_heads
    scale = 1.0 / math.sqrt(dh)
    x = emb * math.sqrt(H) + positional_encoding(S, H)[None]
    keep = jnp.arange(S)[None, None, None, :] < valid_lens[:, None, None, None]

    def ln(z, g, b):
        mu = z.mean(-1, keepdims=True)
        var = ((z - mu) ** 2).mean(-1, keepdims=True)
        return (z - mu) / jnp.sqrt(var + 1e-5) * g + b

    for l in range(L):
        wq = (params["wq"][l] * scale).astype(bf)
        wk, wv, wo = (params[n][l].astype(bf) for n in ("wk", "wv", "wo"))
        w1, w2 = params["w1"][l].astype(bf), params["w2"][l].astype(bf)
        xb = x.astype(bf)
        q = jnp.einsum('bsh,hk->bsk', xb, wq, preferred_element_type=f32)
        k = jnp.einsum('bsh,hk->bsk', xb, wk, preferred_element_type=f32)
        v = jnp.einsum('bsh,hk->bsk', xb, wv, preferred_element_type=f32)
        split = lambda t: t.reshape(B, S, num_heads, dh).transpose(0, 2, 1, 3).astype(bf)
        qh, kh, vh = split(q), split(k), split(v)
        scores = jnp.einsum('bhqd,bhkd->bhqk', qh, kh, preferred_element_type=f32)
        scores = jnp.where(keep, scores, -1e6)
        attn = jax.nn.softmax(scores, axis=-1)
        o = jnp.einsum('bhqk,bhkd->bhqd', attn.astype(bf), vh, preferred_element_type=f32)
        o = o.transpose(0, 2, 1, 3).reshape(B, S, H)
        o = jnp.einsum('bsh,hk->bsk', o.astype(bf), wo, preferred_element_type=f32)
        y = ln(x + o, params["g1"][l], params["b1"][l])
        h1 = jnp.maximum(
            jnp.einsum('bsh,hf->bsf', y.astype(bf), w1, preferred_element_type=f32)
            + params["bb1"][l], 0.0)
        f = (jnp.einsum('bsf,fh->bsh', h1.astype(bf), w2, preferred_element_type=f32)
             + params["bb2"][l])
        x = ln(y + f, params["g2"][l], params["b2"][l])
    return x


# --------------------------------------------------------------------------- #
# Parameter init (weights stacked with a leading layer axis)
# --------------------------------------------------------------------------- #
def init_params(key, vocab, H, F, num_layers):
    ks = jax.random.split(key, 9)

    def w(k, shape):
        return 0.1 * jax.random.normal(k, shape, jnp.float32)

    return {
        "embedding": w(ks[0], (vocab, H)),
        "wq": w(ks[1], (num_layers, H, H)),
        "wk": w(ks[2], (num_layers, H, H)),
        "wv": w(ks[3], (num_layers, H, H)),
        "wo": w(ks[4], (num_layers, H, H)),
        "g1": jnp.ones((num_layers, H), jnp.float32),
        "b1": jnp.zeros((num_layers, H), jnp.float32),
        "w1": w(ks[5], (num_layers, H, F)),
        "bb1": 0.01 * jax.random.normal(ks[6], (num_layers, F), jnp.float32),
        "w2": w(ks[7], (num_layers, F, H)),
        "bb2": 0.01 * jax.random.normal(ks[8], (num_layers, H), jnp.float32),
        "g2": jnp.ones((num_layers, H), jnp.float32),
        "b2": jnp.zeros((num_layers, H), jnp.float32),
    }


if __name__ == "__main__":
    B, S, H = 2, 8, 32
    num_heads, F, vocab, num_layers = 4, 64, 50, 2

    key = jax.random.PRNGKey(0)
    k_par, k_tok = jax.random.split(key)
    params = init_params(k_par, vocab, H, F, num_layers)
    tokens = jax.random.randint(k_tok, (B, S), 0, vocab, dtype=jnp.int32)
    valid_lens = jnp.array([5, 8], dtype=jnp.int32)

    out = transformer_encoder(tokens, valid_lens, params, num_heads)
    out = jax.block_until_ready(out)

    ref = ref_encoder(tokens, valid_lens, params, num_heads)
    assert out.shape == (B, S, H)
    assert jnp.allclose(out, ref, atol=3e-2, rtol=3e-2), "mismatch vs JAX reference"

    print("KERNEL_OK")
</pallas_src>

<mosaic_0001>
module attributes {stable_mosaic.version = 11 : i64} {
  func.func @fused_encoder_kernel(%arg0: i32, %arg1: i32, %arg2: memref<2x1x8xf32, #tpu.memory_space<vmem>>, %arg3: memref<16x32xf32, #tpu.memory_space<vmem>>, %arg4: memref<1x32x32xbf16, #tpu.memory_space<vmem>>, %arg5: memref<1x32x32xbf16, #tpu.memory_space<vmem>>, %arg6: memref<1x32x32xbf16, #tpu.memory_space<vmem>>, %arg7: memref<1x32x32xbf16, #tpu.memory_space<vmem>>, %arg8: memref<1x1x32xf32, #tpu.memory_space<vmem>>, %arg9: memref<1x1x32xf32, #tpu.memory_space<vmem>>, %arg10: memref<1x32x64xbf16, #tpu.memory_space<vmem>>, %arg11: memref<1x1x64xf32, #tpu.memory_space<vmem>>, %arg12: memref<1x64x32xbf16, #tpu.memory_space<vmem>>, %arg13: memref<1x1x32xf32, #tpu.memory_space<vmem>>, %arg14: memref<1x1x32xf32, #tpu.memory_space<vmem>>, %arg15: memref<1x1x32xf32, #tpu.memory_space<vmem>>, %arg16: memref<16x32xf32, #tpu.memory_space<vmem>>, %arg17: memref<16x32xf32, #tpu.memory_space<vmem>>) attributes {dimension_semantics = [#tpu.dimension_semantics<parallel>, #tpu.dimension_semantics<arbitrary>], iteration_bounds = array<i64: 1, 2>, scalar_prefetch = 0 : i64, scratch_operands = 1 : i64, tpu.core_type = #tpu.core_type<tc>, window_params = [{transform_indices = @transform_0, window_bounds = array<i64: 2, 1, 8>}, {transform_indices = @transform_1, window_bounds = array<i64: 16, 32>}, {transform_indices = @transform_2, window_bounds = array<i64: 1, 32, 32>}, {transform_indices = @transform_3, window_bounds = array<i64: 1, 32, 32>}, {transform_indices = @transform_4, window_bounds = array<i64: 1, 32, 32>}, {transform_indices = @transform_5, window_bounds = array<i64: 1, 32, 32>}, {transform_indices = @transform_6, window_bounds = array<i64: 1, 1, 32>}, {transform_indices = @transform_7, window_bounds = array<i64: 1, 1, 32>}, {transform_indices = @transform_8, window_bounds = array<i64: 1, 32, 64>}, {transform_indices = @transform_9, window_bounds = array<i64: 1, 1, 64>}, {transform_indices = @transform_10, window_bounds = array<i64: 1, 64, 32>}, {transform_indices = @transform_11, window_bounds = array<i64: 1, 1, 32>}, {transform_indices = @transform_12, window_bounds = array<i64: 1, 1, 32>}, {transform_indices = @transform_13, window_bounds = array<i64: 1, 1, 32>}, {transform_indices = @transform_14, window_bounds = array<i64: 16, 32>}]} {
    %c0_i32 = arith.constant 0 : i32
    %0 = arith.cmpi eq, %arg1, %c0_i32 : i32
    %1 = arith.extui %0 : i1 to i32
    %c0_i32_0 = arith.constant 0 : i32
    %2 = arith.cmpi ne, %1, %c0_i32_0 : i32
    scf.if %2 {
      %c0_64 = arith.constant 0 : index
      %c0_65 = arith.constant 0 : index
      %141 = vector.load %arg3[%c0_64, %c0_65] : memref<16x32xf32, #tpu.memory_space<vmem>>, vector<16x32xf32>
      %c0_66 = arith.constant 0 : index
      %c0_67 = arith.constant 0 : index
      %142 = vector.load %arg17[%c0_66, %c0_67] : memref<16x32xf32, #tpu.memory_space<vmem>>, vector<16x32xf32>
      tpu.vector_store %arg17[%c0_66, %c0_67], %141 {strides = array<i32>} : memref<16x32xf32, #tpu.memory_space<vmem>>, vector<16x32xf32>,
    } else {
    }
    %c0 = arith.constant 0 : index
    %c0_1 = arith.constant 0 : index
    %3 = vector.load %arg17[%c0, %c0_1] : memref<16x32xf32, #tpu.memory_space<vmem>>, vector<16x32xf32>
    %4 = arith.truncf %3 : vector<16x32xf32> to vector<16x32xbf16>
    %c0_2 = arith.constant 0 : index
    %c0_3 = arith.constant 0 : index
    %c0_4 = arith.constant 0 : index
    %5 = vector.load %arg4[%c0_2, %c0_3, %c0_4] : memref<1x32x32xbf16, #tpu.memory_space<vmem>>, vector<1x32x32xbf16>
    %6 = vector.shape_cast %5 : vector<1x32x32xbf16> to vector<32x32xbf16>
    %cst = arith.constant dense<0.000000e+00> : vector<16x32xf32>
    %7 = tpu.matmul %4, %6, %cst {dimension_numbers = #tpu.dot_dimension_numbers<[1], [0], [0], [1], [0, 0, 1, 1], [], []>} : vector<16x32xbf16>, vector<32x32xbf16>, vector<16x32xf32> -> vector<16x32xf32>
    %c0_5 = arith.constant 0 : index
    %c0_6 = arith.constant 0 : index
    %c0_7 = arith.constant 0 : index
    %8 = vector.load %arg5[%c0_5, %c0_6, %c0_7] : memref<1x32x32xbf16, #tpu.memory_space<vmem>>, vector<1x32x32xbf16>
    %9 = vector.shape_cast %8 : vector<1x32x32xbf16> to vector<32x32xbf16>
    %cst_8 = arith.constant dense<0.000000e+00> : vector<16x32xf32>
    %10 = tpu.matmul %4, %9, %cst_8 {dimension_numbers = #tpu.dot_dimension_numbers<[1], [0], [0], [1], [0, 0, 1, 1], [], []>} : vector<16x32xbf16>, vector<32x32xbf16>, vector<16x32xf32> -> vector<16x32xf32>
    %c0_9 = arith.constant 0 : index
    %c0_10 = arith.constant 0 : index
    %c0_11 = arith.constant 0 : index
    %11 = vector.load %arg6[%c0_9, %c0_10, %c0_11] : memref<1x32x32xbf16, #tpu.memory_space<vmem>>, vector<1x32x32xbf16>
    %12 = vector.shape_cast %11 : vector<1x32x32xbf16> to vector<32x32xbf16>
    %cst_12 = arith.constant dense<0.000000e+00> : vector<16x32xf32>
    %13 = tpu.matmul %4, %12, %cst_12 {dimension_numbers = #tpu.dot_dimension_numbers<[1], [0], [0], [1], [0, 0, 1, 1], [], []>} : vector<16x32xbf16>, vector<32x32xbf16>, vector<16x32xf32> -> vector<16x32xf32>
    %14 = vector.shape_cast %7 : vector<16x32xf32> to vector<2x8x32xf32>
    %15 = vector.extract_strided_slice %14 {offsets = [0, 0, 0], sizes = [2, 8, 8], strides = [1, 1, 1]} : vector<2x8x32xf32> to vector<2x8x8xf32>
    %16 = vector.extract_strided_slice %14 {offsets = [0, 0, 8], sizes = [2, 8, 8], strides = [1, 1, 1]} : vector<2x8x32xf32> to vector<2x8x8xf32>
    %17 = vector.extract_strided_slice %14 {offsets = [0, 0, 16], sizes = [2, 8, 8], strides = [1, 1, 1]} : vector<2x8x32xf32> to vector<2x8x8xf32>
    %18 = vector.extract_strided_slice %14 {offsets = [0, 0, 24], sizes = [2, 8, 8], strides = [1, 1, 1]} : vector<2x8x32xf32> to vector<2x8x8xf32>
    %19 = tpu.concatenate %15, %16, %17, %18 in 0 : vector<2x8x8xf32>, vector<2x8x8xf32>, vector<2x8x8xf32>, vector<2x8x8xf32> -> vector<8x8x8xf32>
    %20 = arith.truncf %19 : vector<8x8x8xf32> to vector<8x8x8xbf16>
    %21 = vector.shape_cast %10 : vector<16x32xf32> to vector<2x8x32xf32>
    %22 = vector.extract_strided_slice %21 {offsets = [0, 0, 0], sizes = [2, 8, 8], strides = [1, 1, 1]} : vector<2x8x32xf32> to vector<2x8x8xf32>
    %23 = vector.extract_strided_slice %21 {offsets = [0, 0, 8], sizes = [2, 8, 8], strides = [1, 1, 1]} : vector<2x8x32xf32> to vector<2x8x8xf32>
    %24 = vector.extract_strided_slice %21 {offsets = [0, 0, 16], sizes = [2, 8, 8], strides = [1, 1, 1]} : vector<2x8x32xf32> to vector<2x8x8xf32>
    %25 = vector.extract_strided_slice %21 {offsets = [0, 0, 24], sizes = [2, 8, 8], strides = [1, 1, 1]} : vector<2x8x32xf32> to vector<2x8x8xf32>
    %26 = tpu.concatenate %22, %23, %24, %25 in 0 : vector<2x8x8xf32>, vector<2x8x8xf32>, vector<2x8x8xf32>, vector<2x8x8xf32> -> vector<8x8x8xf32>
    %27 = arith.truncf %26 : vector<8x8x8xf32> to vector<8x8x8xbf16>
    %28 = vector.shape_cast %13 : vector<16x32xf32> to vector<2x8x32xf32>
    %29 = vector.extract_strided_slice %28 {offsets = [0, 0, 0], sizes = [2, 8, 8], strides = [1, 1, 1]} : vector<2x8x32xf32> to vector<2x8x8xf32>
    %30 = vector.extract_strided_slice %28 {offsets = [0, 0, 8], sizes = [2, 8, 8], strides = [1, 1, 1]} : vector<2x8x32xf32> to vector<2x8x8xf32>
    %31 = vector.extract_strided_slice %28 {offsets = [0, 0, 16], sizes = [2, 8, 8], strides = [1, 1, 1]} : vector<2x8x32xf32> to vector<2x8x8xf32>
    %32 = vector.extract_strided_slice %28 {offsets = [0, 0, 24], sizes = [2, 8, 8], strides = [1, 1, 1]} : vector<2x8x32xf32> to vector<2x8x8xf32>
    %33 = tpu.concatenate %29, %30, %31, %32 in 0 : vector<2x8x8xf32>, vector<2x8x8xf32>, vector<2x8x8xf32>, vector<2x8x8xf32> -> vector<8x8x8xf32>
    %34 = arith.truncf %33 : vector<8x8x8xf32> to vector<8x8x8xbf16>
    %c0_13 = arith.constant 0 : index
    %c0_14 = arith.constant 0 : index
    %c0_15 = arith.constant 0 : index
    %35 = vector.load %arg2[%c0_13, %c0_14, %c0_15] : memref<2x1x8xf32, #tpu.memory_space<vmem>>, vector<2x1x8xf32>
    %36 = tpu.concatenate %35, %35, %35, %35 in 0 : vector<2x1x8xf32>, vector<2x1x8xf32>, vector<2x1x8xf32>, vector<2x1x8xf32> -> vector<8x1x8xf32>
    "tpu.trace_start"() <{level = 10 : i32, message = "bqd,bkd->bqk"}> : () -> ()
    %cst_16 = arith.constant dense<0.000000e+00> : vector<8x8x8xf32>
    %37 = tpu.matmul %20, %27, %cst_16 {dimension_numbers = #tpu.dot_dimension_numbers<[2], [2], [1], [1], [0, 0, 0, 1, 1, 1], [0], [0]>} : vector<8x8x8xbf16>, vector<8x8x8xbf16>, vector<8x8x8xf32> -> vector<8x8x8xf32>
    "tpu.trace_stop"() : () -> ()
    %38 = vector.broadcast %36 : vector<8x1x8xf32> to vector<8x8x8xf32>
    %39 = arith.addf %37, %38 : vector<8x8x8xf32>
    %cst_17 = arith.constant dense<0xFF800000> : vector<8x8xf32>
    %40 = vector.multi_reduction <maximumf>, %39, %cst_17 [2] : vector<8x8x8xf32> to vector<8x8xf32>
    %41 = vector.shape_cast %40 : vector<8x8xf32> to vector<8x8x1xf32>
    %42 = vector.broadcast %41 : vector<8x8x1xf32> to vector<8x8x8xf32>
    %43 = arith.subf %39, %42 : vector<8x8x8xf32>
    %44 = math.exp %43 : vector<8x8x8xf32>
    %cst_18 = arith.constant dense<0.000000e+00> : vector<8x8xf32>
    %45 = vector.multi_reduction <add>, %44, %cst_18 [2] : vector<8x8x8xf32> to vector<8x8xf32>
    %46 = vector.shape_cast %45 : vector<8x8xf32> to vector<8x8x1xf32>
    %47 = tpu.reciprocal %46 {approx = true} : vector<8x8x1xf32> -> vector<8x8x1xf32>
    %48 = vector.broadcast %47 : vector<8x8x1xf32> to vector<8x8x8xf32>
    %49 = arith.mulf %44, %48 : vector<8x8x8xf32>
    %50 = arith.truncf %49 : vector<8x8x8xf32> to vector<8x8x8xbf16>
    "tpu.trace_start"() <{level = 10 : i32, message = "bqk,bkd->bqd"}> : () -> ()
    %cst_19 = arith.constant dense<0.000000e+00> : vector<8x8x8xf32>
    %51 = tpu.matmul %50, %34, %cst_19 {dimension_numbers = #tpu.dot_dimension_numbers<[2], [1], [1], [2], [0, 0, 0, 1, 1, 2], [0], [0]>} : vector<8x8x8xbf16>, vector<8x8x8xbf16>, vector<8x8x8xf32> -> vector<8x8x8xf32>
    "tpu.trace_stop"() : () -> ()
    %52 = vector.extract_strided_slice %51 {offsets = [0, 0, 0], sizes = [2, 8, 8], strides = [1, 1, 1]} : vector<8x8x8xf32> to vector<2x8x8xf32>
    %53 = vector.shape_cast %52 : vector<2x8x8xf32> to vector<16x8xf32>
    %54 = vector.extract_strided_slice %51 {offsets = [2, 0, 0], sizes = [2, 8, 8], strides = [1, 1, 1]} : vector<8x8x8xf32> to vector<2x8x8xf32>
    %55 = vector.shape_cast %54 : vector<2x8x8xf32> to vector<16x8xf32>
    %56 = vector.extract_strided_slice %51 {offsets = [4, 0, 0], sizes = [2, 8, 8], strides = [1, 1, 1]} : vector<8x8x8xf32> to vector<2x8x8xf32>
    %57 = vector.shape_cast %56 : vector<2x8x8xf32> to vector<16x8xf32>
    %58 = vector.extract_strided_slice %51 {offsets = [6, 0, 0], sizes = [2, 8, 8], strides = [1, 1, 1]} : vector<8x8x8xf32> to vector<2x8x8xf32>
    %59 = vector.shape_cast %58 : vector<2x8x8xf32> to vector<16x8xf32>
    %60 = tpu.concatenate %53, %55, %57, %59 in 1 : vector<16x8xf32>, vector<16x8xf32>, vector<16x8xf32>, vector<16x8xf32> -> vector<16x32xf32>
    %61 = arith.truncf %60 : vector<16x32xf32> to vector<16x32xbf16>
    %c0_20 = arith.constant 0 : index
    %c0_21 = arith.constant 0 : index
    %c0_22 = arith.constant 0 : index
    %62 = vector.load %arg7[%c0_20, %c0_21, %c0_22] : memref<1x32x32xbf16, #tpu.memory_space<vmem>>, vector<1x32x32xbf16>
    %63 = vector.shape_cast %62 : vector<1x32x32xbf16> to vector<32x32xbf16>
    %cst_23 = arith.constant dense<0.000000e+00> : vector<16x32xf32>
    %64 = tpu.matmul %61, %63, %cst_23 {dimension_numbers = #tpu.dot_dimension_numbers<[1], [0], [0], [1], [0, 0, 1, 1], [], []>} : vector<16x32xbf16>, vector<32x32xbf16>, vector<16x32xf32> -> vector<16x32xf32>
    %65 = arith.addf %3, %64 : vector<16x32xf32>
    %c0_24 = arith.constant 0 : index
    %c0_25 = arith.constant 0 : index
    %c0_26 = arith.constant 0 : index
    %66 = vector.load %arg8[%c0_24, %c0_25, %c0_26] : memref<1x1x32xf32, #tpu.memory_space<vmem>>, vector<1x1x32xf32>
    %67 = vector.shape_cast %66 : vector<1x1x32xf32> to vector<1x32xf32>
    %c0_27 = arith.constant 0 : index
    %c0_28 = arith.constant 0 : index
    %c0_29 = arith.constant 0 : index
    %68 = vector.load %arg9[%c0_27, %c0_28, %c0_29] : memref<1x1x32xf32, #tpu.memory_space<vmem>>, vector<1x1x32xf32>
    %69 = vector.shape_cast %68 : vector<1x1x32xf32> to vector<1x32xf32>
    %cst_30 = arith.constant dense<0.000000e+00> : vector<16xf32>
    %70 = vector.multi_reduction <add>, %65, %cst_30 [1] : vector<16x32xf32> to vector<16xf32>
    %71 = vector.shape_cast %70 : vector<16xf32> to vector<16x1xf32>
    %cst_31 = arith.constant 3.200000e+01 : f32
    %72 = vector.broadcast %cst_31 : f32 to vector<16x1xf32>
    %73 = arith.divf %71, %72 : vector<16x1xf32>
    %74 = vector.broadcast %73 : vector<16x1xf32> to vector<16x32xf32>
    %75 = arith.subf %65, %74 : vector<16x32xf32>
    %76 = arith.mulf %75, %75 : vector<16x32xf32>
    %cst_32 = arith.constant dense<0.000000e+00> : vector<16xf32>
    %77 = vector.multi_reduction <add>, %76, %cst_32 [1] : vector<16x32xf32> to vector<16xf32>
    %78 = vector.shape_cast %77 : vector<16xf32> to vector<16x1xf32>
    %cst_33 = arith.constant 3.200000e+01 : f32
    %79 = vector.broadcast %cst_33 : f32 to vector<16x1xf32>
    %80 = arith.divf %78, %79 : vector<16x1xf32>
    %81 = vector.broadcast %73 : vector<16x1xf32> to vector<16x32xf32>
    %82 = arith.subf %65, %81 : vector<16x32xf32>
    %cst_34 = arith.constant 9.99999974E-6 : f32
    %83 = vector.broadcast %cst_34 : f32 to vector<16x1xf32>
    %84 = arith.addf %80, %83 : vector<16x1xf32>
    %85 = math.rsqrt %84 : vector<16x1xf32>
    %86 = vector.broadcast %85 : vector<16x1xf32> to vector<16x32xf32>
    %87 = arith.mulf %82, %86 : vector<16x32xf32>
    %88 = vector.broadcast %67 : vector<1x32xf32> to vector<16x32xf32>
    %89 = arith.mulf %87, %88 : vector<16x32xf32>
    %90 = vector.broadcast %69 : vector<1x32xf32> to vector<16x32xf32>
    %91 = arith.addf %89, %90 : vector<16x32xf32>
    %92 = arith.truncf %91 : vector<16x32xf32> to vector<16x32xbf16>
    %c0_35 = arith.constant 0 : index
    %c0_36 = arith.constant 0 : index
    %c0_37 = arith.constant 0 : index
    %93 = vector.load %arg10[%c0_35, %c0_36, %c0_37] : memref<1x32x64xbf16, #tpu.memory_space<vmem>>, vector<1x32x64xbf16>
    %94 = vector.shape_cast %93 : vector<1x32x64xbf16> to vector<32x64xbf16>
    %cst_38 = arith.constant dense<0.000000e+00> : vector<16x64xf32>
    %95 = tpu.matmul %92, %94, %cst_38 {dimension_numbers = #tpu.dot_dimension_numbers<[1], [0], [0], [1], [0, 0, 1, 1], [], []>} : vector<16x32xbf16>, vector<32x64xbf16>, vector<16x64xf32> -> vector<16x64xf32>
    %c0_39 = arith.constant 0 : index
    %c0_40 = arith.constant 0 : index
    %c0_41 = arith.constant 0 : index
    %96 = vector.load %arg11[%c0_39, %c0_40, %c0_41] : memref<1x1x64xf32, #tpu.memory_space<vmem>>, vector<1x1x64xf32>
    %97 = vector.shape_cast %96 : vector<1x1x64xf32> to vector<1x64xf32>
    %98 = vector.broadcast %97 : vector<1x64xf32> to vector<16x64xf32>
    %99 = arith.addf %95, %98 : vector<16x64xf32>
    %cst_42 = arith.constant 0.000000e+00 : f32
    %100 = vector.broadcast %cst_42 : f32 to vector<16x64xf32>
    %101 = arith.maximumf %99, %100 : vector<16x64xf32>
    %102 = arith.truncf %101 : vector<16x64xf32> to vector<16x64xbf16>
    %c0_43 = arith.constant 0 : index
    %c0_44 = arith.constant 0 : index
    %c0_45 = arith.constant 0 : index
    %103 = vector.load %arg12[%c0_43, %c0_44, %c0_45] : memref<1x64x32xbf16, #tpu.memory_space<vmem>>, vector<1x64x32xbf16>
    %104 = vector.shape_cast %103 : vector<1x64x32xbf16> to vector<64x32xbf16>
    %cst_46 = arith.constant dense<0.000000e+00> : vector<16x32xf32>
    %105 = tpu.matmul %102, %104, %cst_46 {dimension_numbers = #tpu.dot_dimension_numbers<[1], [0], [0], [1], [0, 0, 1, 1], [], []>} : vector<16x64xbf16>, vector<64x32xbf16>, vector<16x32xf32> -> vector<16x32xf32>
    %c0_47 = arith.constant 0 : index
    %c0_48 = arith.constant 0 : index
    %c0_49 = arith.constant 0 : index
    %106 = vector.load %arg13[%c0_47, %c0_48, %c0_49] : memref<1x1x32xf32, #tpu.memory_space<vmem>>, vector<1x1x32xf32>
    %107 = vector.shape_cast %106 : vector<1x1x32xf32> to vector<1x32xf32>
    %108 = vector.broadcast %107 : vector<1x32xf32> to vector<16x32xf32>
    %109 = arith.addf %105, %108 : vector<16x32xf32>
    %110 = arith.addf %91, %109 : vector<16x32xf32>
    %c0_50 = arith.constant 0 : index
    %c0_51 = arith.constant 0 : index
    %c0_52 = arith.constant 0 : index
    %111 = vector.load %arg14[%c0_50, %c0_51, %c0_52] : memref<1x1x32xf32, #tpu.memory_space<vmem>>, vector<1x1x32xf32>
    %112 = vector.shape_cast %111 : vector<1x1x32xf32> to vector<1x32xf32>
    %c0_53 = arith.constant 0 : index
    %c0_54 = arith.constant 0 : index
    %c0_55 = arith.constant 0 : index
    %113 = vector.load %arg15[%c0_53, %c0_54, %c0_55] : memref<1x1x32xf32, #tpu.memory_space<vmem>>, vector<1x1x32xf32>
    %114 = vector.shape_cast %113 : vector<1x1x32xf32> to vector<1x32xf32>
    %cst_56 = arith.constant dense<0.000000e+00> : vector<16xf32>
    %115 = vector.multi_reduction <add>, %110, %cst_56 [1] : vector<16x32xf32> to vector<16xf32>
    %116 = vector.shape_cast %115 : vector<16xf32> to vector<16x1xf32>
    %cst_57 = arith.constant 3.200000e+01 : f32
    %117 = vector.broadcast %cst_57 : f32 to vector<16x1xf32>
    %118 = arith.divf %116, %117 : vector<16x1xf32>
    %119 = vector.broadcast %118 : vector<16x1xf32> to vector<16x32xf32>
    %120 = arith.subf %110, %119 : vector<16x32xf32>
    %121 = arith.mulf %120, %120 : vector<16x32xf32>
    %cst_58 = arith.constant dense<0.000000e+00> : vector<16xf32>
    %122 = vector.multi_reduction <add>, %121, %cst_58 [1] : vector<16x32xf32> to vector<16xf32>
    %123 = vector.shape_cast %122 : vector<16xf32> to vector<16x1xf32>
    %cst_59 = arith.constant 3.200000e+01 : f32
    %124 = vector.broadcast %cst_59 : f32 to vector<16x1xf32>
    %125 = arith.divf %123, %124 : vector<16x1xf32>
    %126 = vector.broadcast %118 : vector<16x1xf32> to vector<16x32xf32>
    %127 = arith.subf %110, %126 : vector<16x32xf32>
    %cst_60 = arith.constant 9.99999974E-6 : f32
    %128 = vector.broadcast %cst_60 : f32 to vector<16x1xf32>
    %129 = arith.addf %125, %128 : vector<16x1xf32>
    %130 = math.rsqrt %129 : vector<16x1xf32>
    %131 = vector.broadcast %130 : vector<16x1xf32> to vector<16x32xf32>
    %132 = arith.mulf %127, %131 : vector<16x32xf32>
    %133 = vector.broadcast %112 : vector<1x32xf32> to vector<16x32xf32>
    %134 = arith.mulf %132, %133 : vector<16x32xf32>
    %135 = vector.broadcast %114 : vector<1x32xf32> to vector<16x32xf32>
    %136 = arith.addf %134, %135 : vector<16x32xf32>
    %c0_61 = arith.constant 0 : index
    %c0_62 = arith.constant 0 : index
    %137 = vector.load %arg17[%c0_61, %c0_62] : memref<16x32xf32, #tpu.memory_space<vmem>>, vector<16x32xf32>
    tpu.vector_store %arg17[%c0_61, %c0_62], %136 {strides = array<i32>} : memref<16x32xf32, #tpu.memory_space<vmem>>, vector<16x32xf32>,
    %c1_i32 = arith.constant 1 : i32
    %138 = arith.cmpi eq, %arg1, %c1_i32 : i32
    %139 = arith.extui %138 : i1 to i32
    %c0_i32_63 = arith.constant 0 : i32
    %140 = arith.cmpi ne, %139, %c0_i32_63 : i32
    scf.if %140 {
      %c0_64 = arith.constant 0 : index
      %c0_65 = arith.constant 0 : index
      %141 = vector.load %arg16[%c0_64, %c0_65] : memref<16x32xf32, #tpu.memory_space<vmem>>, vector<16x32xf32>
      tpu.vector_store %arg16[%c0_64, %c0_65], %136 {strides = array<i32>} : memref<16x32xf32, #tpu.memory_space<vmem>>, vector<16x32xf32>,
    } else {
    }
    return
  }
  func.func @transform_0(%arg0: i32, %arg1: i32) -> (i32, i32, i32) {
    %c0_i32 = arith.constant 0 : i32
    %c0_i32_0 = arith.constant 0 : i32
    %c0_i32_1 = arith.constant 0 : i32
    return %arg0, %c0_i32, %c0_i32_0 : i32, i32, i32
  }
  func.func @transform_1(%arg0: i32, %arg1: i32) -> (i32, i32) {
    %c0_i32 = arith.constant 0 : i32
    %c0_i32_0 = arith.constant 0 : i32
    return %arg0, %c0_i32 : i32, i32
  }
  func.func @transform_2(%arg0: i32, %arg1: i32) -> (i32, i32, i32) {
    %c0_i32 = arith.constant 0 : i32
    %c0_i32_0 = arith.constant 0 : i32
    %c0_i32_1 = arith.constant 0 : i32
    return %arg1, %c0_i32, %c0_i32_0 : i32, i32, i32
  }
  func.func @transform_3(%arg0: i32, %arg1: i32) -> (i32, i32, i32) {
    %c0_i32 = arith.constant 0 : i32
    %c0_i32_0 = arith.constant 0 : i32
    %c0_i32_1 = arith.constant 0 : i32
    return %arg1, %c0_i32, %c0_i32_0 : i32, i32, i32
  }
  func.func @transform_4(%arg0: i32, %arg1: i32) -> (i32, i32, i32) {
    %c0_i32 = arith.constant 0 : i32
    %c0_i32_0 = arith.constant 0 : i32
    %c0_i32_1 = arith.constant 0 : i32
    return %arg1, %c0_i32, %c0_i32_0 : i32, i32, i32
  }
  func.func @transform_5(%arg0: i32, %arg1: i32) -> (i32, i32, i32) {
    %c0_i32 = arith.constant 0 : i32
    %c0_i32_0 = arith.constant 0 : i32
    %c0_i32_1 = arith.constant 0 : i32
    return %arg1, %c0_i32, %c0_i32_0 : i32, i32, i32
  }
  func.func @transform_6(%arg0: i32, %arg1: i32) -> (i32, i32, i32) {
    %c0_i32 = arith.constant 0 : i32
    %c0_i32_0 = arith.constant 0 : i32
    %c0_i32_1 = arith.constant 0 : i32
    return %arg1, %c0_i32, %c0_i32_0 : i32, i32, i32
  }
  func.func @transform_7(%arg0: i32, %arg1: i32) -> (i32, i32, i32) {
    %c0_i32 = arith.constant 0 : i32
    %c0_i32_0 = arith.constant 0 : i32
    %c0_i32_1 = arith.constant 0 : i32
    return %arg1, %c0_i32, %c0_i32_0 : i32, i32, i32
  }
  func.func @transform_8(%arg0: i32, %arg1: i32) -> (i32, i32, i32) {
    %c0_i32 = arith.constant 0 : i32
    %c0_i32_0 = arith.constant 0 : i32
    %c0_i32_1 = arith.constant 0 : i32
    return %arg1, %c0_i32, %c0_i32_0 : i32, i32, i32
  }
  func.func @transform_9(%arg0: i32, %arg1: i32) -> (i32, i32, i32) {
    %c0_i32 = arith.constant 0 : i32
    %c0_i32_0 = arith.constant 0 : i32
    %c0_i32_1 = arith.constant 0 : i32
    return %arg1, %c0_i32, %c0_i32_0 : i32, i32, i32
  }
  func.func @transform_10(%arg0: i32, %arg1: i32) -> (i32, i32, i32) {
    %c0_i32 = arith.constant 0 : i32
    %c0_i32_0 = arith.constant 0 : i32
    %c0_i32_1 = arith.constant 0 : i32
    return %arg1, %c0_i32, %c0_i32_0 : i32, i32, i32
  }
  func.func @transform_11(%arg0: i32, %arg1: i32) -> (i32, i32, i32) {
    %c0_i32 = arith.constant 0 : i32
    %c0_i32_0 = arith.constant 0 : i32
    %c0_i32_1 = arith.constant 0 : i32
    return %arg1, %c0_i32, %c0_i32_0 : i32, i32, i32
  }
  func.func @transform_12(%arg0: i32, %arg1: i32) -> (i32, i32, i32) {
    %c0_i32 = arith.constant 0 : i32
    %c0_i32_0 = arith.constant 0 : i32
    %c0_i32_1 = arith.constant 0 : i32
    return %arg1, %c0_i32, %c0_i32_0 : i32, i32, i32
  }
  func.func @transform_13(%arg0: i32, %arg1: i32) -> (i32, i32, i32) {
    %c0_i32 = arith.constant 0 : i32
    %c0_i32_0 = arith.constant 0 : i32
    %c0_i32_1 = arith.constant 0 : i32
    return %arg1, %c0_i32, %c0_i32_0 : i32, i32, i32
  }
  func.func @transform_14(%arg0: i32, %arg1: i32) -> (i32, i32) {
    %c0_i32 = arith.constant 0 : i32
    %c0_i32_0 = arith.constant 0 : i32
    return %arg0, %c0_i32 : i32, i32
  }
}

</mosaic_0001>

<bundles_post_ra>
// kernel: tpu_custom_call.1
= control target key start
LH: loop header
LB: loop body
LE: loop exit
PB: predicated region body
PF: predicated region fallthrough
CT: control target
= control target key end

     0   :  { %s3683_s0 = inlined_call_operand.hbm [shape: f32[2,1,8], index: 0, kind: input, shape index: {}]   ;;  %s3684_s1 = inlined_call_operand.hbm [shape: f32[16,32], index: 1, kind: input, shape index: {}]   ;;  %s3685_s2 = inlined_call_operand.vmem [shape: bf16[2,32,32], index: 2, kind: input, shape index: {}]   ;;  %s3686_s3 = inlined_call_operand.vmem [shape: bf16[2,32,32], index: 3, kind: input, shape index: {}]   ;;  %s3687_s4 = inlined_call_operand.vmem [shape: bf16[2,32,32], index: 4, kind: input, shape index: {}]   ;;  %s3688_s5 = inlined_call_operand.hbm [shape: bf16[2,32,32], index: 5, kind: input, shape index: {}]   ;;  %s3689_s6 = inlined_call_operand.vmem [shape: f32[2,1,32], index: 6, kind: input, shape index: {}]   ;;  %s3690_s7 = inlined_call_operand.vmem [shape: f32[2,1,32], index: 7, kind: input, shape index: {}]   ;;  %s3691_s8 = inlined_call_operand.hbm [shape: bf16[2,32,64], index: 8, kind: input, shape index: {}]   ;;  %s3692_s9 = inlined_call_operand.vmem [shape: f32[2,1,64], index: 9, kind: input, shape index: {}]   ;;  %s3693_s10 = inlined_call_operand.vmem [shape: bf16[2,64,32], index: 10, kind: input, shape index: {}]   ;;  %s3694_s11 = inlined_call_operand.vmem [shape: f32[2,1,32], index: 11, kind: input, shape index: {}]   ;;  %s3695_s12 = inlined_call_operand.vmem [shape: f32[2,1,32], index: 12, kind: input, shape index: {}]   ;;  %s3696_s13 = inlined_call_operand.vmem [shape: f32[2,1,32], index: 13, kind: input, shape index: {}]   ;;  %s3697_s14 = inlined_call_operand.hbm [shape: f32[16,32], index: 14, kind: output, shape index: {}]  }
   0x1   :  { %3704 = sst [smem:[#allocation19_spill]] %s3683_s0 }
   0x2   :  { %3705 = sst [smem:[#allocation20_spill]] %s3684_s1 }
   0x3   :  { %3706 = sst [smem:[#allocation21_spill]] %s3685_s2 }
   0x4   :  { %3707 = sst [smem:[#allocation22_spill]] %s3686_s3 }
   0x5   :  { %3708 = sst [smem:[#allocation23_spill]] %s3687_s4 }
   0x6   :  { %3709 = sst [smem:[#allocation24_spill]] %s3688_s5 }
   0x7   :  { %3710 = sst [smem:[#allocation25_spill]] %s3690_s7 }
   0x8   :  { %3711 = sst [smem:[#allocation26_spill]] %s3691_s8 }
   0x9   :  { %3712 = sst [smem:[#allocation27_spill]] %s3692_s9 }
   0xa   :  { %3713 = sst [smem:[#allocation28_spill]] %s3693_s10 }
   0xb   :  { %3714 = sst [smem:[#allocation29_spill]] %s3694_s11 }
   0xc   :  { %3715 = sst [smem:[#allocation30_spill]] %s3695_s12 }
   0xd   :  { %3716 = sst [smem:[#allocation31_spill]] %s3696_s13 }
   0xe   :  { %3717 = sst [smem:[#allocation32_spill]] %s3697_s14 }
   0xf   :  { %19 = vsyncpa [#allocation4], 0 }
  0x10   :  { %20 = vsyncpa [#allocation7], 0 }
  0x11   :  { %21 = vsyncpa [#allocation5], 0  ;;  %s3213_s29 = smov 0   ;;  %s3215_s30 = smov 0  }
  0x12   :  { %s3217_s15 = smov 0   ;;  %s3219_s16 = smov 0  }
  0x13   :  { %s3221_s17 = smov 0   ;;  %s3223_s18 = smov 0  }
  0x14 LB: > { %3718 = sst [smem:[#allocation15_spill]] %s3104_s15  ;;  %s3242_s19 = sadd.s32 4294967295, %s3116_s18   ;;  %s3116_s18 = sphi %s3223_s18, %s27_s18   ;;  %s3112_s17 = sphi %s3221_s17, %s3759_s17   ;;  %s3108_s16 = sphi %s3219_s16, %s3758_s16   ;;  %s3104_s15 = sphi %s3217_s15, %s3762_s15   ;;  %s3100_s30 = sphi %s3215_s30, %s3761_s30   ;;  %s3096_s29 = sphi %s3213_s29, %s3760_s29  }
  0x15   : > { %3719 = sst [smem:[#allocation16_spill]] %s3112_s17  ;;  %p183_p0 = scmp.ne.s32.totalorder %s3104_s15, %s3100_s30 }
  0x16   : > { %p184_p1 = scmp.eq.s32.totalorder %s3116_s18, 0  ;;  %p189_p2 = scmp.ne.s32.totalorder %s3100_s30, %s3096_s29 }
  0x17   : > { %p3698_p3 = scmp.eq.s32.totalorder %s3242_s19, 0  ;;  %p2426_p5 = scmp.ge.s32.totalorder %s3116_s18, 1 }
  0x18   : > { %p185_p4 = por %p184_p1, %p183_p0  ;;  %p434_p7 = scmp.lt.s32.totalorder %s3116_s18, 3 }
  0x19   : > { %p3253_p6 = por %p3698_p3, %p189_p2  ;;  %s3118_s23 = smov [#allocation3]  }
  0x1a   : > { %p3258_p8 = pnand %p2426_p5, %p434_p7  ;;  %s449_s24 = sshll.u32 %s3118_s23, 4  ;;  %s450_s24 = int_to_ptr.vmem [resolvable:$true] %s449_s24 }
  0x1b   : > { %p2737_p10 = scmp.lt.s32.totalorder %s3116_s18, 2  ;;  %s36_s27 = sadd.s32 1, %s3112_s17 }
  0x1c   : > { %p2721_p9 = pneg %p3258_p8  ;;  %s2933_s28 = scalar_lea.vmem %s450_s24, 32 }
  0x1d   : > { %p3271_p12 = pnand %p2737_p10, %p185_p4  ;;  %p2934_p0 = scmp.ne.s32.totalorder %s450_s24, %s2933_s28 }
  0x1e   : > { %p3267_p11 = pnand %p2721_p9, %p3698_p3  ;;  %p2941_p5 = scmp.lt.s32.totalorder %s450_s24, %s450_s24 }
  0x1f   : > { %p2942_p7 = scmp.lt.s32.totalorder %s2933_s28, %s2933_s28 }
  0x20   : > { %p2924_p13 = pneg %p3267_p11 }
  0x21   : > { %p2943_p9 = por %p2942_p7, %p2941_p5 }
  0x22   : > { %p2936_p1 = pnand %p2934_p0, %p2924_p13 }
  0x24   : > { %p2937_p2 = pneg %p2936_p1 }
  0x26   : > { %p2944_p3 = pnand %p2943_p9, %p2937_p2 }
  0x28   : > { %2947 = shalt.err (!%p2944_p3)
}
  0x29   : > { %s3119_s29 = smov 16   ;;  %s3120_s23 = smov 1  }
  0x2a   : > { %s3724_s0 = sld [smem:[#allocation19_spill]]  ;;  %p37_p4 = scmp.ge.s32.totalorder %s36_s27, 2 }
  0x2b   : > { %s503_s28 = sand.u32 1, %s3116_s18   ;;  %s505_s13 = sand.u32 1, %s3104_s15  }
  0x2c   : > { %s3764_s27 = smov (%p37_p4, %s36_s27), 0  ;;  %s3290_s12 = sshll.u32 %s505_s13, 4 }
  0x2d   : > { %3725 = sst [smem:[#allocation17_spill]] %s3764_s27  ;;  %s173_s11 = ssub.s32 %s3112_s17, %s3764_s27 }
  0x2e   : > { %p174_p3 = scmp.eq.s32.totalorder %s173_s11, 0  ;;  %s2499_s10 = sshll.u32 %s3112_s17, 8 }
  0x2f   : > { %s3726_s5 = sld [smem:[#allocation24_spill]]  ;;  %s507_s20 = scalar_lea.vmem [#allocation8], %s3290_s12 }
  0x30   : > { %2724 = dma.hbm_to_vmem [thread:$0]  (!%p3267_p11), %s3724_s0, 32, %s450_s24, [#allocation4], %s3119_s29, %s3119_s29, %s3120_s23  }
  0x31   : > { %s514_s24 = sshll.u32 %s507_s20, 4  ;;  %s3727_s29 = sadd.s32 1, %s3104_s15  ;;  %s515_s24 = int_to_ptr.vmem [resolvable:$true] %s514_s24 }
  0x32   : > { %s3304_s23 = scalar_select %p174_p3, %s3104_s15, %s3727_s29  }
  0x33   : > { %s3306_s0 = scalar_lea.sflag [#allocation4], %s503_s28  ;;  %p2950_p10 = pneg %p3271_p12 }
  0x34   : > { %3728 = sst [smem:[#allocation18_spill]] %s3304_s23  ;;  %s2961_s13 = scalar_lea.vmem %s515_s24, 256 }
  0x35   : > { %s513_s14 = scalar_lea.hbm %s3726_s5, %s2499_s10  ;;  %p2962_p0 = scmp.ne.s32.totalorder %s515_s24, %s2961_s13 }
  0x36   : > { %s3121_s11 = smov [#allocation8]  }
  0x37   : > { %p2964_p1 = pnand %p2962_p0, %p2950_p10  ;;  %s2966_s27 = sshll.u32 %s3121_s11, 4  ;;  %s2967_s27 = int_to_ptr.vmem [resolvable:$false] %s2966_s27 }
  0x38   : > { %s2968_s7 = scalar_lea.vmem %s2967_s27, 512  ;;  %p2969_p5 = scmp.lt.s32.totalorder %s515_s24, %s2967_s27 }
  0x39   : > { %p2965_p2 = pneg %p2964_p1  ;;  %p2970_p7 = scmp.lt.s32.totalorder %s2968_s7, %s2961_s13 }
  0x3b   : > { %p2971_p9 = por %p2970_p7, %p2969_p5 }
  0x3d   : > { %p2972_p4 = pnand %p2971_p9, %p2965_p2 }
  0x3f   : > { %2975 = shalt.err (!%p2972_p4)
}
  0x40   : > { %s3700_s9 = smov 64   ;;  %s3701_s28 = smov 4  }
  0x41   : > { %2731 = dma.hbm_to_vmem [thread:$0]  (!%p3271_p12), %s513_s14, 256, %s515_s24, %s3306_s0, %s3700_s9, %s3700_s9, %s3701_s28  }
  0x42   : > { %s3124_s20 = smov [#allocation6]  }
  0x43   : > { %s465_s29 = sshll.u32 %s3124_s20, 4  ;;  %s466_s29 = int_to_ptr.vmem [resolvable:$true] %s465_s29 }
  0x44   : > { %s2987_s11 = scalar_lea.vmem %s466_s29, 256  ;;  %p2995_p2 = scmp.lt.s32.totalorder %s466_s29, %s466_s29 }
  0x45   : > { %p2988_p3 = scmp.ne.s32.totalorder %s466_s29, %s2987_s11  ;;  %p2996_p5 = scmp.lt.s32.totalorder %s2987_s11, %s2987_s11 }
  0x47   : > { %p2990_p0 = pnand %p2988_p3, %p2924_p13  ;;  %p2997_p7 = por %p2996_p5, %p2995_p2 }
  0x49   : > { %p2991_p1 = pneg %p2990_p0 }
  0x4b   : > { %p2998_p9 = pnand %p2997_p7, %p2991_p1 }
  0x4d   : > { %3001 = shalt.err (!%p2998_p9)
}
  0x4e   : > { %s3125_s27 = smov 128   ;;  %s3126_s14 = smov 8  }
  0x4f   : > { %s3729_s1 = sld [smem:[#allocation20_spill]]  ;;  %s540_s11 = scalar_lea.vmem [#allocation9], %s3290_s12 }
  0x50   : > { %s3730_s8 = sld [smem:[#allocation26_spill]]  ;;  %s547_s28 = sshll.u32 %s540_s11, 4  ;;  %s548_s28 = int_to_ptr.vmem [resolvable:$true] %s547_s28 }
  0x51   : > { %s3015_s5 = scalar_lea.vmem %s548_s28, 256  ;;  %s3127_s23 = smov [#allocation9]  }
  0x52   : > { %p3016_p13 = scmp.ne.s32.totalorder %s548_s28, %s3015_s5  ;;  %s3020_s25 = sshll.u32 %s3127_s23, 4  ;;  %s3021_s25 = int_to_ptr.vmem [resolvable:$false] %s3020_s25 }
  0x53   : > { %s3022_s15 = scalar_lea.vmem %s3021_s25, 512  ;;  %p3023_p0 = scmp.lt.s32.totalorder %s548_s28, %s3021_s25 }
  0x54   : > { %p3018_p4 = pnand %p3016_p13, %p2950_p10 }
  0x55   : > { %2727 = dma.hbm_to_vmem [thread:$0]  (!%p3267_p11), %s3729_s1, 256, %s466_s29, [#allocation7], %s3125_s27, %s3125_s27, %s3126_s14  }
  0x56   : > { %s546_s9 = scalar_lea.hbm %s3730_s8, %s2499_s10  ;;  %p3019_p3 = pneg %p3018_p4 }
  0x57   : > { %p3024_p11 = scmp.lt.s32.totalorder %s3022_s15, %s3015_s5 }
  0x59   : > { %p3025_p1 = por %p3024_p11, %p3023_p0 }
  0x5b   : > { %p3026_p2 = pnand %p3025_p1, %p3019_p3 }
  0x5d   : > { %3029 = shalt.err (!%p3026_p2)
}
  0x5e   : > { %s3731_s10 = smov 4   ;;  %s3732_s12 = smov 64  }
  0x5f   : > { %2734 = dma.hbm_to_vmem [thread:$0]  (!%p3271_p12), %s546_s9, 256, %s548_s28, %s3306_s0, %s3732_s12, %s3732_s12, %s3731_s10  }
  0x60   : > { %591 = sbr.rel (%p3258_p8) target bundleno = 2550 (0x9f6), region = 76  ;;  %p3733_p10 = scmp.eq.s32.totalorder (!%p3258_p8), %s3242_s19, 0 }
  0x65   : > { %3079 = dma.done.wait (%p3733_p10), [#allocation4], 32   ;;  %p3734_p5 = pmov %p3733_p10 }
  0x67   : > { %3081 = vsyncadd (%p3734_p5), [#allocation4], 4294967264  ;;  %p3735_p7 = pmov %p3734_p5 }
  0x68   : > { %p3736_p9 = pmov %p3734_p5 }
  0x69   : > { %3083 = dma.done.wait (%p3735_p7), [#allocation7], 256  }
  0x6a   : > { %3085 = vsyncadd (%p3736_p9), [#allocation7], 4294967040  ;;  %s601_s5 = sand.u32 1, %s3242_s19   ;;  %s603_s0 = sand.u32 1, %s3100_s30  }
  0x6b   : > { %s3354_s15 = sshll.u32 %s603_s0, 4  ;;  %s602_s22 = scalar_lea.sflag [#allocation4], %s601_s5 }
  0x6c   : > { %3087 = dma.done.wait (%p3253_p6), %s602_s22, 512  }
  0x6d   : > { %3089 = vsyncadd (%p3253_p6), %s602_s22, 4294966784  ;;  %p699_p8 = scmp.lt.s32.totalorder %s3108_s16, 1  ;;  %s3737_s2 = sld [smem:[#allocation21_spill]] }
  0x6e   : > { %s3738_s3 = sld [smem:[#allocation22_spill]]  ;;  %s614_s26 = scalar_lea.vmem [#allocation9], %s3354_s15 }
  0x6f   : > { %s3363_s23 = scalar_select %p699_p8, %s3108_s16, 1 }
  0x70   : > { %s3739_s4 = sld [smem:[#allocation23_spill]]  ;;  %p2449_p6 = scmp.ne.s32.totalorder %s3108_s16, 0 }
  0x71   : > { %s2501_s9 = sshll.u32 %s3363_s23, 4  ;;  %s3741_s29 = sld [smem:[#allocation27_spill]] }
  0x72   : > { %s2504_s1 = sshll.u32 %s3363_s23, 5  ;;  %s3745_s0 = sld [smem:[#allocation31_spill]] }
  0x73   : > { %s703_s24 = scalar_lea.vmem %s3737_s2, %s2501_s9  ;;  %s3742_s2 = sld [smem:[#allocation28_spill]] }
  0x74   : > { %s708_s20 = scalar_lea.vmem %s3738_s3, %s2501_s9  ;;  %s3743_s3 = sld [smem:[#allocation29_spill]] }
  0x76   : > { %s3379_s10 = scalar_lea.vmem %s3739_s4, %s2501_s9  ;;  %s3744_s4 = sld [smem:[#allocation30_spill]] }
  0x77   : > { %s722_s21 = scalar_lea.vmem %s3741_s29, %s3363_s23 }
  0x78   : > { %s736_s22 = scalar_lea.vmem %s3745_s0, %s3363_s23  ;;  %742 = sbr.rel (%p2449_p6) target bundleno = 127 (0x7f), region = 96 }
  0x79   : > { %s3393_s8 = scalar_lea.vmem %s3742_s2, %s2504_s1 }
  0x7a   : > { %s730_s11 = scalar_lea.vmem %s3743_s3, %s3363_s23 }
  0x7c   : > { %s733_s17 = scalar_lea.vmem %s3744_s4, %s3363_s23 }
  0x7d   : > { %v743_v0 = vld [vmem:[#allocation6] sm:$0xff]  ;;  %vm745_vm0 = vcmask 261120   ;;  %v744_v1 = vld [vmem:[#allocation6 + $0x8] sm:$0xff] }
  0x7e   : > { %746 = vst.msk [vmem:[#allocation2] sm:$0xff] %vm745_vm0, %v743_v0  ;;  %747 = vst.msk [vmem:[#allocation2 + $0x8] sm:$0xff] %vm745_vm0, %v744_v1 }
  0x7f PF: > { %v2868_v2 = vld [vmem:[%s708_s20 + $0x8] sm:$0xff]   ;;  %v3128_v3 = vmov 0.0   ;;  %v2870_v5 = vld [vmem:[%s708_s20] sm:$0xff]   ;;  %vm3129_vm1 = vmmov 0   ;;  %vm767_vm2 = vcmask 261120   ;;  %vm1024_vm3 = vcmask 64512   ;;  %s3748_s27 = scalar_lea.vmem %s3689_s6, %s3363_s23 }
  0x80   : > { %2565 = vmatprep.subr.bf16.mxu1 %v3128_v3  ;;  %2557 = vmatprep.subr.bf16.mxu0 %v3128_v3  ;;  %v2869_v4 = vld [vmem:[%s703_s24 + $0x8] sm:$0xff]   ;;  %v2871_v6 = vld [vmem:[%s703_s24] sm:$0xff]   ;;  %s3130_s1 = smov 112   ;;  %s3131_s2 = smov 120   ;;  %vm1492_vm4 = vcmask 1043456   ;;  %vm1884_vm5 = vcmask 130048  }
  0x81   : > { %2566 = vmatpush3.bf16.msra.mxu1 %v2868_v2  ;;  %2569 = vmatprep.mubr.msk.bf16.mxu1 %vm3129_vm1, %v3128_v3  ;;  %v2872_v10 = vld [vmem:[%s3379_s10 + $0x8] sm:$0xff]   ;;  %v2873_v11 = vld [vmem:[%s3379_s10] sm:$0xff]   ;;  %s3132_s3 = smov 104   ;;  %s3746_s4 = scalar_lea.vmem [#allocation8], %s3354_s15  ;;  %vm1887_vm6 = vcmask 195584   ;;  %vm2108_vm7 = vcmask 523264  }
  0x82   : > { %2558 = vmatpush3.bf16.msra.mxu0 %v2869_v4  ;;  %2567 = vmatprep.subr.bf16.mxu1 %v3128_v3  ;;  %s3133_s24 = smov 8   ;;  %s3747_s20 = smov %s3746_s4 }
  0x83   : > { %2559 = vmatprep.subr.bf16.mxu0 %v3128_v3  ;;  %2561 = vmatprep.mubr.msk.bf16.mxu0 %vm3129_vm1, %v3128_v3  ;;  %s3134_s10 = smov 16   ;;  %s3135_s28 = smov 24  }
  0x84   : > { %s3749_s7 = sld [smem:[#allocation25_spill]]  ;;  %p2494_p12 = scmp.ne.s32.totalorder %s3108_s16, 1 }
  0x85   : > { %v3415_v7 = vld [vmem:[#allocation2] sm:$0xff]  ;;  %v3417_v8 = vld [vmem:[#allocation2 + $0x8] sm:$0xff]  ;;  %2568 = vmatpush3.bf16.msra.mxu1 %v2870_v5 }
  0x86   : > { %v750_v9 = vpack.c.bf16 %v3417_v8, %v3415_v7  ;;  %2560 = vmatpush3.bf16.msra.mxu0 %v2871_v6  ;;  %2581 = vmatprep.subr.bf16.mxu1 %v3128_v3 }
  0x87   : > { %2573 = vmatprep.subr.bf16.mxu0 %v3128_v3 }
  0x88   : > { %2570 = vmatmul.mubr.msk.bf16.vlgmr.msra.gmra.mxu1 %vm767_vm2, %v750_v9 }
  0x89   : > { %2562 = vmatmul.mubr.msk.bf16.vlgmr.msra.gmra.mxu0 %vm767_vm2, %v750_v9  ;;  %2583 = vmatprep.mubr.msk.bf16.mxu1 %vm3129_vm1, %v3128_v3 }
  0x8a   : > { %2577 = vmatprep.mubr.msk.bf16.mxu0 %vm3129_vm1, %v3128_v3  ;;  %2574 = vmatpush3.bf16.msra.mxu0 %v2872_v10  ;;  %s3750_s9 = scalar_lea.vmem %s3749_s7, %s3363_s23 }
  0x8b   : > { %2575 = vmatprep.subr.bf16.mxu0 %v3128_v3 }
  0x8e   : > { %2576 = vmatpush3.bf16.msra.mxu0 %v2873_v11  ;;  %v2459_v11 = vld [vmem:[#allocation3] ss:$0 sm:$0xff] }
  0x8f   : > { %2587 = vmatprep.subr.bf16.mxu0 %v3128_v3 }
  0x91   : > { %2578 = vmatmul.mubr.msk.bf16.vlgmr.msra.gmra.mxu0 %vm767_vm2, %v750_v9 }
  0x92   : > { %2589 = vmatprep.mubr.msk.bf16.mxu0 %vm3129_vm1, %v3128_v3 }
 0x148   : > { %v862_v12 = vpop.f32.mrf.mxu1 }
 0x149   : > { %v805_v13 = vpop.f32.mrf.mxu0  ;;  %v974_v14 = vpack.c.bf16 %v862_v12, %v862_v12 }
 0x14a   : > { %v2571_v15 = vpop.f32.mrf.mxu1  ;;  %v946_v23 = vpack.c.bf16 %v805_v13, %v805_v13 }
 0x14b   : > { %v2563_v16 = vpop.f32.mrf.mxu0  ;;  %v1029_v17 = vsel %vm1024_vm3, %v974_v14, 0  ;;  %v2460_v15 = vld [vmem:[#allocation3 + $0x1] ss:$0 sm:$0xff] }
 0x14c   : > { %v865_v18 = vpop.f32.mrf.mxu1  ;;  %2582 = vmatpush3.bf16.xpose.msra.mxu1 %v1029_v17 }
 0x14d   : > { %v808_v19 = vpop.f32.mrf.mxu0  ;;  %v2818_v20 = vpack.i.bf16 %v865_v18, %v862_v12  ;;  %v975_v21 = vpack.c.bf16 %v865_v18, %v865_v18  ;;  %2593 = vmatprep.subr.bf16.mxu1 %v3128_v3 }
 0x14e   : > { %v2572_v22 = vpop.f32.mrf.mxu1  ;;  %v2823_v26 = vpack.i.bf16 %v808_v19, %v805_v13  ;;  %v947_v27 = vpack.c.bf16 %v808_v19, %v808_v19 }
 0x14f   : > { %2819 = vrot.lane.b32.xlu1 %v2818_v20, %s3130_s1  ;;  %2809 = vrot.lane.b32.xlu0 %v2818_v20, %s3131_s2  ;;  %v2564_v24 = vpop.f32.mrf.mxu0  ;;  %v1075_v25 = vsel %vm1024_vm3, %v975_v21, 0 }
 0x150   : > { %2588 = vmatpush3.bf16.xpose.msra.mxu0 %v1075_v25 }
 0x151   : > { %2599 = vmatprep.subr.bf16.mxu0 %v3128_v3  ;;  %v3454_v28 = vpop.f32.mrf.mxu0 }
 0x152   : > { %v1002_v2 = vpack.c.bf16 %v3454_v28, %v3454_v28 }
 0x153   : > { %2584 = vmatmul.mubr.msk.bf16.vlgmr.msra.gmra.mxu1 %vm1024_vm3, %v946_v23  ;;  %2824 = vrot.lane.b32.xlu1 %v2823_v26, %s3130_s1  ;;  %v2579_v29 = vpop.f32.mrf.mxu0 }
 0x154   : > { %2814 = vrot.lane.b32.xlu0 %v2823_v26, %s3131_s2  ;;  %2595 = vmatprep.mubr.msk.bf16.mxu1 %vm3129_vm1, %v3128_v3  ;;  %v1494_v9 = vsel %vm1492_vm4, %v1002_v2, 0 }
 0x155   : > { %v3456_v30 = vpop.f32.mrf.mxu0 }
 0x156   : > { %v1003_v4 = vpack.c.bf16 %v3456_v30, %v3456_v30  ;;  %v3509_v2 = vpack.i.bf16 %v3456_v30, %v3454_v28 }
 0x157   : > { %2834 = vrot.lane.b32.xlu1 %v2823_v26, %s3132_s3  ;;  %2590 = vmatmul.mubr.msk.bf16.vlgmr.msra.gmra.mxu0 %vm1024_vm3, %v947_v27  ;;  %v2580_v31 = vpop.f32.mrf.mxu0 }
 0x158   : > { %2829 = vrot.lane.b32.xlu0 %v2818_v20, %s3132_s3  ;;  %2601 = vmatprep.mubr.msk.bf16.mxu0 %vm3129_vm1, %v3128_v3  ;;  %v1540_v10 = vsel %vm1492_vm4, %v1003_v4, 0 }
 0x1c1   : > { %v2810_v32 = vpop.permute.xlu0 %2809  ;;  %v2820_v35 = vpop.permute.xlu1 %2819 }
 0x1c2   : > { %v2812_v33 = vunpack.i.h.bf16 %v2810_v32  ;;  %v2811_v34 = vunpack.i.l.bf16 %v2810_v32  ;;  %v2822_v38 = vunpack.i.h.bf16 %v2820_v35  ;;  %v2821_v39 = vunpack.i.l.bf16 %v2820_v35 }
 0x1c4   : > { %v977_v36 = vpack.c.bf16 %v2812_v33, %v2812_v33  ;;  %v976_v37 = vpack.c.bf16 %v2811_v34, %v2811_v34  ;;  %v979_v45 = vpack.c.bf16 %v2822_v38, %v2822_v38  ;;  %v978_v46 = vpack.c.bf16 %v2821_v39, %v2821_v39 }
 0x1c5   : > { %v2825_v50 = vpop.permute.xlu1 %2824 }
 0x1c6   : > { %v2815_v40 = vpop.permute.xlu0 %2814  ;;  %v1121_v41 = vsel %vm1024_vm3, %v976_v37, 0  ;;  %v1167_v42 = vsel %vm1024_vm3, %v977_v36, 0  ;;  %v1213_v53 = vsel %vm1024_vm3, %v978_v46, 0  ;;  %v1259_v54 = vsel %vm1024_vm3, %v979_v45, 0 }
 0x1c7   : > { %2594 = vmatpush3.bf16.xpose.msra.mxu1 %v1121_v41  ;;  %2600 = vmatpush3.bf16.xpose.msra.mxu0 %v1167_v42  ;;  %v2817_v43 = vunpack.i.h.bf16 %v2815_v40  ;;  %v2816_v44 = vunpack.i.l.bf16 %v2815_v40  ;;  %v2827_v55 = vunpack.i.h.bf16 %v2825_v50  ;;  %v2826_v56 = vunpack.i.l.bf16 %v2825_v50 }
 0x1c8   : > { %2605 = vmatprep.subr.bf16.mxu1 %v3128_v3  ;;  %2611 = vmatprep.subr.bf16.mxu0 %v3128_v3 }
 0x1c9   : > { %v949_v48 = vpack.c.bf16 %v2817_v43, %v2817_v43  ;;  %v948_v49 = vpack.c.bf16 %v2816_v44, %v2816_v44  ;;  %v951_v59 = vpack.c.bf16 %v2827_v55, %v2827_v55  ;;  %v950_v60 = vpack.c.bf16 %v2826_v56, %v2826_v56  ;;  %v2835_v61 = vpop.permute.xlu1 %2834 }
 0x1ca   : > { %v2830_v47 = vpop.permute.xlu0 %2829  ;;  %v2837_v0 = vunpack.i.h.bf16 %v2835_v61  ;;  %v2836_v1 = vunpack.i.l.bf16 %v2835_v61 }
 0x1cb   : > { %v2832_v51 = vunpack.i.h.bf16 %v2830_v47  ;;  %v2831_v52 = vunpack.i.l.bf16 %v2830_v47 }
 0x1cc   : > { %v953_v5 = vpack.c.bf16 %v2837_v0, %v2837_v0  ;;  %v952_v6 = vpack.c.bf16 %v2836_v1, %v2836_v1 }
 0x1cd   : > { %v981_v57 = vpack.c.bf16 %v2832_v51, %v2832_v51  ;;  %v980_v58 = vpack.c.bf16 %v2831_v52, %v2831_v52 }
 0x1ce   : > { %2596 = vmatmul.mubr.msk.bf16.vlgmr.msra.gmra.mxu1 %vm1024_vm3, %v948_v49  ;;  %2602 = vmatmul.mubr.msk.bf16.vlgmr.msra.gmra.mxu0 %vm1024_vm3, %v949_v48 }
 0x1cf   : > { %2606 = vmatpush3.bf16.xpose.msra.mxu1 %v1213_v53  ;;  %2612 = vmatpush3.bf16.xpose.msra.mxu0 %v1259_v54  ;;  %v1305_v62 = vsel %vm1024_vm3, %v980_v58, 0  ;;  %v1351_v63 = vsel %vm1024_vm3, %v981_v57, 0 }
 0x1d0   : > { %2607 = vmatprep.mubr.msk.bf16.mxu1 %vm3129_vm1, %v3128_v3  ;;  %2613 = vmatprep.mubr.msk.bf16.mxu0 %vm3129_vm1, %v3128_v3 }
 0x1d1   : > { %2617 = vmatprep.subr.bf16.mxu1 %v3128_v3  ;;  %2623 = vmatprep.subr.bf16.mxu0 %v3128_v3 }
 0x1d6   : > { %2608 = vmatmul.mubr.msk.bf16.vlgmr.msra.gmra.mxu1 %vm1024_vm3, %v950_v60  ;;  %2614 = vmatmul.mubr.msk.bf16.vlgmr.msra.gmra.mxu0 %vm1024_vm3, %v951_v59 }
 0x1d7   : > { %2618 = vmatpush3.bf16.xpose.msra.mxu1 %v1305_v62  ;;  %2624 = vmatpush3.bf16.xpose.msra.mxu0 %v1351_v63 }
 0x1d8   : > { %2619 = vmatprep.mubr.msk.bf16.mxu1 %vm3129_vm1, %v3128_v3  ;;  %2625 = vmatprep.mubr.msk.bf16.mxu0 %vm3129_vm1, %v3128_v3 }
 0x1d9   : > { %2629 = vmatprep.subr.bf16.mxu1 %v3128_v3  ;;  %2635 = vmatprep.subr.bf16.mxu0 %v3128_v3 }
 0x1de   : > { %2620 = vmatmul.mubr.msk.bf16.vlgmr.msra.gmra.mxu1 %vm1024_vm3, %v952_v6  ;;  %2626 = vmatmul.mubr.msk.bf16.vlgmr.msra.gmra.mxu0 %vm1024_vm3, %v953_v5 }
 0x1df   : > { %2630 = vmatpush3.bf16.msra.mxu1 %v1494_v9  ;;  %2636 = vmatpush3.bf16.msra.mxu0 %v1540_v10 }
 0x1e0   : > { %2637 = vmatprep.mubr.msk.bf16.mxu0 %vm3129_vm1, %v3128_v3  ;;  %2647 = vmatprep.subr.bf16.mxu0 %v3128_v3 }
 0x1e1   : > { %2631 = vmatprep.mubr.msk.bf16.mxu1 %vm3129_vm1, %v3128_v3  ;;  %2641 = vmatprep.subr.bf16.mxu1 %v3128_v3 }
 0x213   : > { %v1065_v12 = vpop.f32.mrf.mxu1 }
 0x214   : > { %v3496_v13 = vadd.f32 %v2459_v11, %v1065_v12 }
 0x215   : > { %v2585_v14 = vpop.f32.mrf.mxu1 }
 0x216   : > { %v1393_v16 = vsel %vm1024_vm3, %v3496_v13, -inf }
 0x217   : > { %v1068_v17 = vpop.f32.mrf.mxu1  ;;  %1394 = vmax.xlane.f32.xlu0 %v1393_v16  ;;  %v1111_v18 = vpop.f32.mrf.mxu0 }
 0x218   : > { %v1112_v19 = vadd.f32 %v2460_v15, %v1111_v18 }
 0x219   : > { %v2586_v20 = vpop.f32.mrf.mxu1  ;;  %v2591_v21 = vpop.f32.mrf.mxu0 }
 0x21a   : > { %v1396_v22 = vsel %vm1024_vm3, %v1112_v19, -inf }
 0x21b   : > { %1397 = vmax.xlane.f32.xlu1 %v1396_v22  ;;  %v1114_v23 = vpop.f32.mrf.mxu0 }
 0x21d   : > { %v2592_v24 = vpop.f32.mrf.mxu0 }
 0x28e   : > { %v1157_v25 = vpop.f32.mrf.mxu1  ;;  %v1203_v26 = vpop.f32.mrf.mxu0 }
 0x28f   : > { %v1158_v27 = vadd.f32 %v2459_v11, %v1157_v25  ;;  %v1204_v32 = vadd.f32 %v2460_v15, %v1203_v26 }
 0x290   : > { %v2597_v29 = vpop.f32.mrf.mxu1  ;;  %v2603_v31 = vpop.f32.mrf.mxu0 }
 0x291   : > { %v1399_v33 = vsel %vm1024_vm3, %v1158_v27, -inf  ;;  %v1402_v38 = vsel %vm1024_vm3, %v1204_v32, -inf }
 0x292   : > { %1400 = vmax.xlane.f32.xlu0 %v1399_v33  ;;  %v1160_v34 = vpop.f32.mrf.mxu1  ;;  %v1206_v35 = vpop.f32.mrf.mxu0 }
 0x294   : > { %v2598_v36 = vpop.f32.mrf.mxu1  ;;  %v2604_v37 = vpop.f32.mrf.mxu0 }
 0x296   : > { %v1249_v39 = vpop.f32.mrf.mxu1  ;;  %1403 = vmax.xlane.f32.xlu0 %v1402_v38  ;;  %v1295_v40 = vpop.f32.mrf.mxu0 }
 0x297   : > { %v1250_v41 = vadd.f32 %v2459_v11, %v1249_v39  ;;  %v1296_v42 = vadd.f32 %v2460_v15, %v1295_v40 }
 0x298   : > { %v2609_v43 = vpop.f32.mrf.mxu1  ;;  %v2615_v44 = vpop.f32.mrf.mxu0 }
 0x299   : > { %v1405_v45 = vsel %vm1024_vm3, %v1250_v41, -inf  ;;  %v1408_v46 = vsel %vm1024_vm3, %v1296_v42, -inf }
 0x29a   : > { %v1252_v47 = vpop.f32.mrf.mxu1  ;;  %1406 = vmax.xlane.f32.xlu1 %v1405_v45  ;;  %1409 = vmax.xlane.f32.xlu0 %v1408_v46  ;;  %v1298_v48 = vpop.f32.mrf.mxu0 }
 0x29c   : > { %v2610_v49 = vpop.f32.mrf.mxu1  ;;  %v2616_v50 = vpop.f32.mrf.mxu0 }
 0x29e   : > { %v1341_v51 = vpop.f32.mrf.mxu1  ;;  %v1387_v52 = vpop.f32.mrf.mxu0 }
 0x29f   : > { %v1342_v53 = vadd.f32 %v2459_v11, %v1341_v51  ;;  %v1388_v54 = vadd.f32 %v2460_v15, %v1387_v52 }
 0x2a0   : > { %v2621_v55 = vpop.f32.mrf.mxu1  ;;  %v2627_v56 = vpop.f32.mrf.mxu0 }
 0x2a1   : > { %v1411_v57 = vsel %vm1024_vm3, %v1342_v53, -inf  ;;  %v1414_v58 = vsel %vm1024_vm3, %v1388_v54, -inf  ;;  %v1395_v6 = vpop.xlane.xlu0 %1394 }
 0x2a2   : > { %v1344_v59 = vpop.f32.mrf.mxu1  ;;  %1412 = vmax.xlane.f32.xlu1 %v1411_v57  ;;  %1415 = vmax.xlane.f32.xlu0 %v1414_v58  ;;  %v1390_v60 = vpop.f32.mrf.mxu0  ;;  %v1417_v9 = vsub.f32 %v3496_v13, %v1395_v6 }
 0x2a4   : > { %v2622_v61 = vpop.f32.mrf.mxu1  ;;  %v1398_v62 = vpop.xlane.xlu1 %1397  ;;  %v1425_v10 = vmul.f32 1.442695, %v1417_v9 }
 0x2a5   : > { %v1418_v63 = vsub.f32 %v1112_v19, %v1398_v62  ;;  %v2628_v0 = vpop.f32.mrf.mxu0 }
 0x2a7   : > { %v1427_v1 = vmul.f32 1.442695, %v1418_v63 }
 0x2a9   : > { %2882 = vpow2.f32 %v1427_v1 }
 0x2aa   : > { %2884 = vpow2.f32 %v1425_v10 }
 0x2b3   : > { %2839 = vrot.lane.b32.xlu1 %v3509_v2, %s3131_s2 }
 0x2b6   : > { %v2883_v4 = vpop.eup %2882 }
 0x2b7   : > { %v1444_v5 = vsel %vm1024_vm3, %v2883_v4, 0.0  ;;  %v3515_v11 = vpop.eup %2884 }
 0x2b8   : > { %1445 = vadd.xlane.f32.xlu0 %v1444_v5  ;;  %v1441_v12 = vsel %vm1024_vm3, %v3515_v11, 0.0 }
 0x2d7   : > { %1442 = vadd.xlane.f32.xlu1 %v1441_v12 }
 0x31b   : > { %v1401_v28 = vpop.xlane.xlu0 %1400 }
 0x31c   : > { %v1419_v30 = vsub.f32 %v1158_v27, %v1401_v28 }
 0x31e   : > { %v1429_v14 = vmul.f32 1.442695, %v1419_v30 }
 0x31f   : > { %v1404_v15 = vpop.xlane.xlu0 %1403 }
 0x320   : > { %2886 = vpow2.f32 %v1429_v14  ;;  %v1420_v16 = vsub.f32 %v1204_v32, %v1404_v15 }
 0x322   : > { %v1431_v17 = vmul.f32 1.442695, %v1420_v16 }
 0x323   : > { %v1407_v18 = vpop.xlane.xlu1 %1406  ;;  %v1410_v19 = vpop.xlane.xlu0 %1409 }
 0x324   : > { %2888 = vpow2.f32 %v1431_v17  ;;  %v1421_v20 = vsub.f32 %v1250_v41, %v1407_v18  ;;  %v1422_v13 = vsub.f32 %v1296_v42, %v1410_v19 }
 0x326   : > { %v1433_v21 = vmul.f32 1.442695, %v1421_v20  ;;  %v1435_v22 = vmul.f32 1.442695, %v1422_v13 }
 0x328   : > { %2890 = vpow2.f32 %v1433_v21 }
 0x329   : > { %2892 = vpow2.f32 %v1435_v22 }
 0x32b   : > { %v1413_v23 = vpop.xlane.xlu1 %1412  ;;  %v1416_v24 = vpop.xlane.xlu0 %1415 }
 0x32c   : > { %v1423_v25 = vsub.f32 %v1342_v53, %v1413_v23  ;;  %v1424_v26 = vsub.f32 %v1388_v54, %v1416_v24 }
 0x32d   : > { %v2887_v29 = vpop.eup %2886 }
 0x32e   : > { %v1437_v27 = vmul.f32 1.442695, %v1423_v25  ;;  %v1439_v31 = vmul.f32 1.442695, %v1424_v26  ;;  %v1447_v33 = vsel %vm1024_vm3, %v2887_v29, 0.0 }
 0x32f   : > { %1448 = vadd.xlane.f32.xlu1 %v1447_v33  ;;  %v2840_v44 = vpop.permute.xlu1 %2839 }
 0x330   : > { %2894 = vpow2.f32 %v1437_v27  ;;  %v2842_v45 = vunpack.i.h.bf16 %v2840_v44  ;;  %v2841_v52 = vunpack.i.l.bf16 %v2840_v44 }
 0x331   : > { %v2889_v32 = vpop.eup %2888  ;;  %2896 = vpow2.f32 %v1439_v31 }
 0x332   : > { %v1450_v34 = vsel %vm1024_vm3, %v2889_v32, 0.0  ;;  %v1005_v47 = vpack.c.bf16 %v2842_v45, %v2842_v45  ;;  %v1004_v54 = vpack.c.bf16 %v2841_v52, %v2841_v52 }
 0x333   : > { %1451 = vadd.xlane.f32.xlu0 %v1450_v34 }
 0x334   : > { %v1632_v50 = vsel %vm1492_vm4, %v1005_v47, 0  ;;  %v1586_v57 = vsel %vm1492_vm4, %v1004_v54, 0  ;;  %v2874_v47 = vld [vmem:[%s3746_s4 + $0x8] sm:$0xff]  }
 0x335   : > { %v3521_v35 = vpop.eup %2890  ;;  %v2875_v54 = vld [vmem:[%s3747_s20] sm:$0xff]  }
 0x336   : > { %v3523_v36 = vpop.eup %2892  ;;  %v1453_v37 = vsel %vm1024_vm3, %v3521_v35, 0.0 }
 0x337   : > { %1454 = vadd.xlane.f32.xlu1 %v1453_v37  ;;  %v1456_v38 = vsel %vm1024_vm3, %v3523_v36, 0.0 }
 0x338   : > { %1457 = vadd.xlane.f32.xlu0 %v1456_v38 }
 0x33d   : > { %v3529_v39 = vpop.eup %2894 }
 0x33e   : > { %v3531_v40 = vpop.eup %2896  ;;  %v1459_v41 = vsel %vm1024_vm3, %v3529_v39, 0.0 }
 0x33f   : > { %1460 = vadd.xlane.f32.xlu1 %v1459_v41  ;;  %v1462_v42 = vsel %vm1024_vm3, %v3531_v40, 0.0 }
 0x340   : > { %1463 = vadd.xlane.f32.xlu0 %v1462_v42 }
 0x341   : > { %v1446_v43 = vpop.xlane.xlu0 %1445 }
 0x342   : > { %2898 = vrcp.f32 %v1446_v43 }
 0x34f   : > { %v2899_v46 = vpop.eup %2898 }
 0x350   : > { %2849 = vrot.lane.b32.xlu1 %v3509_v2, %s3132_s3  ;;  %v1474_v48 = vmul.f32 %v2899_v46, %v2883_v4 }
 0x352   : > { %v1482_v49 = vpack.c.bf16 %v1474_v48, %v1474_v48 }
 0x354   : > { %2638 = vmatmul.mubr.msk.bf16.vlgmr.msra.gmra.mxu0 %vm1024_vm3, %v1482_v49 }
 0x355   : > { %2648 = vmatpush3.bf16.msra.mxu0 %v1632_v50  ;;  %2649 = vmatprep.mubr.msk.bf16.mxu0 %vm3129_vm1, %v3128_v3 }
 0x356   : > { %2844 = vrot.lane.b32.xlu0 %v3509_v2, %s3130_s1  ;;  %2659 = vmatprep.subr.bf16.mxu0 %v3128_v3 }
 0x360   : > { %v1443_v51 = vpop.xlane.xlu1 %1442 }
 0x361   : > { %2900 = vrcp.f32 %v1443_v51 }
 0x36e   : > { %v2901_v53 = vpop.eup %2900 }
 0x36f   : > { %v1473_v55 = vmul.f32 %v2901_v53, %v3515_v11 }
 0x371   : > { %v1481_v56 = vpack.c.bf16 %v1473_v55, %v1473_v55 }
 0x373   : > { %2632 = vmatmul.mubr.msk.bf16.vlgmr.msra.gmra.mxu1 %vm1024_vm3, %v1481_v56 }
 0x374   : > { %2642 = vmatpush3.bf16.msra.mxu1 %v1586_v57  ;;  %2643 = vmatprep.mubr.msk.bf16.mxu1 %vm3129_vm1, %v3128_v3 }
 0x375   : > { %2653 = vmatprep.subr.bf16.mxu1 %v3128_v3 }
 0x3b8   : > { %v1449_v58 = vpop.xlane.xlu1 %1448 }
 0x3b9   : > { %2902 = vrcp.f32 %v1449_v58 }
 0x3bc   : > { %v1452_v59 = vpop.xlane.xlu0 %1451 }
 0x3bd   : > { %2904 = vrcp.f32 %v1452_v59 }
 0x3c0   : > { %v1455_v60 = vpop.xlane.xlu1 %1454 }
 0x3c1   : > { %2906 = vrcp.f32 %v1455_v60  ;;  %v1458_v61 = vpop.xlane.xlu0 %1457 }
 0x3c2   : > { %2908 = vrcp.f32 %v1458_v61 }
 0x3c6   : > { %v2903_v62 = vpop.eup %2902 }
 0x3c7   : > { %v1475_v63 = vmul.f32 %v2903_v62, %v2887_v29 }
 0x3c8   : > { %v1461_v0 = vpop.xlane.xlu1 %1460 }
 0x3c9   : > { %2910 = vrcp.f32 %v1461_v0  ;;  %v1464_v1 = vpop.xlane.xlu0 %1463  ;;  %v1483_v2 = vpack.c.bf16 %v1475_v63, %v1475_v63 }
 0x3ca   : > { %v2905_v4 = vpop.eup %2904  ;;  %2912 = vrcp.f32 %v1464_v1 }
 0x3cb   : > { %2644 = vmatmul.mubr.msk.bf16.vlgmr.msra.gmra.mxu1 %vm1024_vm3, %v1483_v2  ;;  %v1476_v5 = vmul.f32 %v2905_v4, %v2889_v32 }
 0x3cc   : > { %v2850_v6 = vpop.permute.xlu1 %2849  ;;  %2655 = vmatprep.mubr.msk.bf16.mxu1 %vm3129_vm1, %v3128_v3 }
 0x3cd   : > { %v2845_v9 = vpop.permute.xlu0 %2844  ;;  %v1484_v10 = vpack.c.bf16 %v1476_v5, %v1476_v5  ;;  %v2851_v12 = vunpack.i.l.bf16 %v2850_v6  ;;  %v2852_v15 = vunpack.i.h.bf16 %v2850_v6 }
 0x3ce   : > { %v2907_v11 = vpop.eup %2906  ;;  %v2847_v28 = vunpack.i.h.bf16 %v2845_v9  ;;  %v2846_v30 = vunpack.i.l.bf16 %v2845_v9 }
 0x3cf   : > { %v2909_v14 = vpop.eup %2908  ;;  %2650 = vmatmul.mubr.msk.bf16.vlgmr.msra.gmra.mxu0 %vm1024_vm3, %v1484_v10  ;;  %v1477_v18 = vmul.f32 %v2907_v11, %v3521_v35  ;;  %v1008_v20 = vpack.c.bf16 %v2851_v12, %v2851_v12  ;;  %v1009_v22 = vpack.c.bf16 %v2852_v15, %v2852_v15 }
 0x3d0   : > { %v1007_v16 = vpack.c.bf16 %v2847_v28, %v2847_v28  ;;  %v1006_v17 = vpack.c.bf16 %v2846_v30, %v2846_v30  ;;  %2661 = vmatprep.mubr.msk.bf16.mxu0 %vm3129_vm1, %v3128_v3  ;;  %v1478_v19 = vmul.f32 %v2909_v14, %v3523_v36 }
 0x3d1   : > { %v1485_v23 = vpack.c.bf16 %v1477_v18, %v1477_v18  ;;  %v1770_v26 = vsel %vm1492_vm4, %v1008_v20, 0  ;;  %v1816_v27 = vsel %vm1492_vm4, %v1009_v22, 0 }
 0x3d2   : > { %v1678_v13 = vsel %vm1492_vm4, %v1006_v17, 0  ;;  %v1724_v21 = vsel %vm1492_vm4, %v1007_v16, 0  ;;  %v1486_v24 = vpack.c.bf16 %v1478_v19, %v1478_v19 }
 0x3d3   : > { %2654 = vmatpush3.bf16.msra.mxu1 %v1678_v13  ;;  %2660 = vmatpush3.bf16.msra.mxu0 %v1724_v21 }
 0x3d4   : > { %2665 = vmatprep.subr.bf16.mxu1 %v3128_v3  ;;  %2671 = vmatprep.subr.bf16.mxu0 %v3128_v3 }
 0x3d6   : > { %v2911_v25 = vpop.eup %2910  ;;  %2656 = vmatmul.mubr.msk.bf16.vlgmr.msra.gmra.mxu1 %vm1024_vm3, %v1485_v23 }
 0x3d7   : > { %v2913_v29 = vpop.eup %2912  ;;  %2666 = vmatpush3.bf16.msra.mxu1 %v1770_v26  ;;  %2662 = vmatmul.mubr.msk.bf16.vlgmr.msra.gmra.mxu0 %vm1024_vm3, %v1486_v24  ;;  %v1479_v31 = vmul.f32 %v2911_v25, %v3529_v39 }
 0x3d8   : > { %2672 = vmatpush3.bf16.msra.mxu0 %v1816_v27  ;;  %2667 = vmatprep.mubr.msk.bf16.mxu1 %vm3129_vm1, %v3128_v3  ;;  %v1480_v33 = vmul.f32 %v2913_v29, %v3531_v40 }
 0x3d9   : > { %2673 = vmatprep.mubr.msk.bf16.mxu0 %vm3129_vm1, %v3128_v3  ;;  %2677 = vmatprep.subr.bf16.mxu1 %v3128_v3  ;;  %v1487_v32 = vpack.c.bf16 %v1479_v31, %v1479_v31 }
 0x3da   : > { %2685 = vmatprep.subr.bf16.mxu0 %v3128_v3  ;;  %v1488_v34 = vpack.c.bf16 %v1480_v33, %v1480_v33 }
 0x3de   : > { %2668 = vmatmul.mubr.msk.bf16.vlgmr.msra.gmra.mxu1 %vm1024_vm3, %v1487_v32 }
 0x3df   : > { %2674 = vmatmul.mubr.msk.bf16.vlgmr.msra.gmra.mxu0 %vm1024_vm3, %v1488_v34  ;;  %2681 = vmatprep.mubr.msk.bf16.mxu1 %vm3129_vm1, %v3128_v3 }
 0x3e0   : > { %2689 = vmatprep.mubr.msk.bf16.mxu0 %vm3129_vm1, %v3128_v3  ;;  %2678 = vmatpush3.bf16.msra.mxu1 %v2874_v47 }
 0x3e1   : > { %2679 = vmatprep.subr.bf16.mxu1 %v3128_v3 }
 0x3e4   : > { %2680 = vmatpush3.bf16.msra.mxu1 %v2875_v54  ;;  %v2480_v54 = vld [vmem:[%s3748_s27] ss:$0 sm:$0xff] }
 0x3e5   : > { %2693 = vmatprep.subr.bf16.mxu1 %v3128_v3 }
 0x414   : > { %v1576_v35 = vpop.f32.mrf.mxu0 }
 0x416   : > { %v2639_v36 = vpop.f32.mrf.mxu0 }
 0x418   : > { %v1579_v37 = vpop.f32.mrf.mxu0 }
 0x41a   : > { %v2640_v38 = vpop.f32.mrf.mxu0 }
 0x433   : > { %v1530_v39 = vpop.f32.mrf.mxu1 }
 0x435   : > { %v2633_v40 = vpop.f32.mrf.mxu1 }
 0x437   : > { %v1533_v41 = vpop.f32.mrf.mxu1 }
 0x439   : > { %v2634_v42 = vpop.f32.mrf.mxu1 }
 0x48b   : > { %v1622_v43 = vpop.f32.mrf.mxu1 }
 0x48d   : > { %v2645_v44 = vpop.f32.mrf.mxu1 }
 0x48e   : > { %v2877_v44 = vld [vmem:[%s614_s26] sm:$0xff]  }
 0x48f   : > { %v1625_v45 = vpop.f32.mrf.mxu1  ;;  %v1668_v46 = vpop.f32.mrf.mxu0 }
 0x490   : > { %v2853_v48 = vpack.i.bf16 %v1668_v46, %v1622_v43  ;;  %v2876_v43 = vld [vmem:[%s614_s26 + $0x8] sm:$0xff]  }
 0x491   : > { %v2646_v49 = vpop.f32.mrf.mxu1  ;;  %v2651_v50 = vpop.f32.mrf.mxu0  ;;  %2686 = vmatpush3.bf16.msra.mxu0 %v2876_v43  ;;  %v2878_v45 = vld [vmem:[%s3393_s8 + $0x18] sm:$0xff]  }
 0x492   : > { %2854 = vrot.lane.b32.xlu1 %v2853_v48, %s3133_s24  ;;  %2687 = vmatprep.subr.bf16.mxu0 %v3128_v3 }
 0x493   : > { %v1671_v51 = vpop.f32.mrf.mxu0 }
 0x495   : > { %v2652_v52 = vpop.f32.mrf.mxu0  ;;  %2688 = vmatpush3.bf16.msra.mxu0 %v2877_v44 }
 0x496   : > { %v1714_v53 = vpop.f32.mrf.mxu1 }
 0x497   : > { %v1760_v55 = vpop.f32.mrf.mxu0 }
 0x498   : > { %v2657_v56 = vpop.f32.mrf.mxu1  ;;  %v2858_v57 = vpack.i.bf16 %v1760_v55, %v1714_v53 }
 0x499   : > { %v2663_v58 = vpop.f32.mrf.mxu0 }
 0x49a   : > { %v1717_v59 = vpop.f32.mrf.mxu1  ;;  %2859 = vrot.lane.b32.xlu0 %v2858_v57, %s3134_s10  ;;  %v2481_v58 = vld [vmem:[%s3750_s9] ss:$0 sm:$0xff] }
 0x49b   : > { %v1763_v60 = vpop.f32.mrf.mxu0 }
 0x49c   : > { %v2658_v61 = vpop.f32.mrf.mxu1 }
 0x49d   : > { %v2664_v62 = vpop.f32.mrf.mxu0 }
 0x49e   : > { %v1806_v63 = vpop.f32.mrf.mxu1 }
 0x49f   : > { %v1852_v0 = vpop.f32.mrf.mxu0 }
 0x4a0   : > { %v2669_v1 = vpop.f32.mrf.mxu1  ;;  %v2863_v2 = vpack.i.bf16 %v1852_v0, %v1806_v63  ;;  %v2879_v63 = vld [vmem:[%s3393_s8 + $0x10] sm:$0xff]   ;;  %v2880_v0 = vld [vmem:[%s3393_s8 + $0x8] sm:$0xff]  }
 0x4a1   : > { %v2675_v4 = vpop.f32.mrf.mxu0  ;;  %v2881_v1 = vld [vmem:[%s3393_s8] sm:$0xff]  }
 0x4a2   : > { %v1809_v5 = vpop.f32.mrf.mxu1  ;;  %2864 = vrot.lane.b32.xlu1 %v2863_v2, %s3135_s28  ;;  %v2482_v2 = vld [vmem:[%s722_s21] ss:$0 sm:$0xff] }
 0x4a3   : > { %v1855_v6 = vpop.f32.mrf.mxu0 }
 0x4a4   : > { %v2670_v9 = vpop.f32.mrf.mxu1 }
 0x4a5   : > { %v2676_v10 = vpop.f32.mrf.mxu0 }
 0x504   : > { %v2855_v11 = vpop.permute.xlu1 %2854 }
 0x505   : > { %v2857_v28 = vunpack.i.h.bf16 %v2855_v11  ;;  %v2856_v30 = vunpack.i.l.bf16 %v2855_v11 }
 0x507   : > { %v1883_v17 = vsel %vm1024_vm3, %v1576_v35, %v2857_v28  ;;  %v1882_v18 = vsel %vm1024_vm3, %v1530_v39, %v2856_v30 }
 0x50c   : > { %v2860_v12 = vpop.permute.xlu0 %2859 }
 0x50d   : > { %v2862_v14 = vunpack.i.h.bf16 %v2860_v12  ;;  %v2861_v15 = vunpack.i.l.bf16 %v2860_v12 }
 0x50f   : > { %v1886_v13 = vsel %vm1884_vm5, %v1883_v17, %v2862_v14  ;;  %v1885_v21 = vsel %vm1884_vm5, %v1882_v18, %v2861_v15 }
 0x514   : > { %v2865_v16 = vpop.permute.xlu1 %2864 }
 0x515   : > { %v2867_v19 = vunpack.i.h.bf16 %v2865_v16  ;;  %v2866_v20 = vunpack.i.l.bf16 %v2865_v16 }
 0x517   : > { %v1889_v22 = vsel %vm1887_vm6, %v1886_v13, %v2867_v19  ;;  %v1888_v23 = vsel %vm1887_vm6, %v1885_v21, %v2866_v20 }
 0x518   : > { %v1890_v24 = vpack.c.bf16 %v1889_v22, %v1888_v23 }
 0x51a   : > { %2682 = vmatmul.mubr.msk.bf16.vlgmr.msra.gmra.mxu1 %vm767_vm2, %v1890_v24 }
 0x51b   : > { %2701 = vmatprep.mubr.msk.bf16.mxu1 %vm3129_vm1, %v3128_v3  ;;  %2694 = vmatpush3.bf16.msra.mxu1 %v2878_v45 }
 0x51c   : > { %2695 = vmatprep.subr.bf16.mxu1 %v3128_v3 }
 0x51f   : > { %2696 = vmatpush3.bf16.msra.mxu1 %v2879_v63 }
 0x520   : > { %2697 = vmatprep.subr.bf16.mxu1 %v3128_v3 }
 0x523   : > { %2698 = vmatpush3.bf16.msra.mxu1 %v2880_v0 }
 0x524   : > { %2699 = vmatprep.subr.bf16.mxu1 %v3128_v3  ;;  %v2486_v3 = vld [vmem:[%s730_s11] ss:$0 sm:$0xff] }
 0x527   : > { %2700 = vmatpush3.bf16.msra.mxu1 %v2881_v1 }
 0x5da   : > { %v1944_v25 = vpop.f32.mrf.mxu1 }
 0x5db   : > { %v1951_v26 = vadd.f32 %v1944_v25, %v3415_v7 }
 0x5dc   : > { %v2683_v29 = vpop.f32.mrf.mxu1 }
 0x5dd   : > { %v1955_v27 = vsel %vm767_vm2, %v1951_v26, 0.0 }
 0x5de   : > { %1956 = vadd.xlane.f32.xlu0 %v1955_v27  ;;  %v1947_v31 = vpop.f32.mrf.mxu1 }
 0x5df   : > { %v1952_v33 = vadd.f32 %v1947_v31, %v3417_v8 }
 0x5e0   : > { %v2684_v32 = vpop.f32.mrf.mxu1 }
 0x5e1   : > { %v1958_v34 = vsel %vm767_vm2, %v1952_v33, 0.0 }
 0x5e2   : > { %1959 = vadd.xlane.f32.xlu1 %v1958_v34 }
 0x667   : > { %v1957_v35 = vpop.xlane.xlu0 %1956 }
 0x668   : > { %v1962_v36 = vmul.f32 0.03125, %v1957_v35 }
 0x66a   : > { %v1964_v37 = vsub.f32 %v1951_v26, %v1962_v36 }
 0x66b   : > { %v1960_v38 = vpop.xlane.xlu1 %1959 }
 0x66c   : > { %v1963_v39 = vmul.f32 0.03125, %v1960_v38  ;;  %v1966_v7 = vmul.f32 %v1964_v37, %v1964_v37 }
 0x66e   : > { %v1965_v40 = vsub.f32 %v1952_v33, %v1963_v39  ;;  %v1968_v41 = vsel %vm767_vm2, %v1966_v7, 0.0 }
 0x66f   : > { %1969 = vadd.xlane.f32.xlu0 %v1968_v41  ;;  %v2492_v41 = vld [vmem:[%s733_s17] ss:$0 sm:$0xff] }
 0x670   : > { %v1967_v42 = vmul.f32 %v1965_v40, %v1965_v40 }
 0x672   : > { %v1971_v8 = vsel %vm767_vm2, %v1967_v42, 0.0 }
 0x673   : > { %1972 = vadd.xlane.f32.xlu0 %v1971_v8  ;;  %v2493_v8 = vld [vmem:[%s736_s22] ss:$0 sm:$0xff] }
 0x6f8   : > { %v1970_v46 = vpop.xlane.xlu0 %1969 }
 0x6f9   : > { %v1974_v47 = vmul.f32 0.03125, %v1970_v46 }
 0x6fb   : > { %v1976_v48 = vadd.f32 1e-05, %v1974_v47 }
 0x6fc   : > { %v1973_v49 = vpop.xlane.xlu0 %1972 }
 0x6fd   : > { %2914 = vrsqrt.f32 %v1976_v48  ;;  %v1975_v50 = vmul.f32 0.03125, %v1973_v49 }
 0x6ff   : > { %v1977_v51 = vadd.f32 1e-05, %v1975_v50 }
 0x701   : > { %2916 = vrsqrt.f32 %v1977_v51 }
 0x70a   : > { %v2915_v52 = vpop.eup %2914 }
 0x70b   : > { %v1980_v53 = vmul.f32 %v2915_v52, %v1964_v37 }
 0x70d   : > { %v1988_v57 = vmul.f32 %v2480_v54, %v1980_v53 }
 0x70e   : > { %v2917_v55 = vpop.eup %2916 }
 0x70f   : > { %v1981_v56 = vmul.f32 %v2917_v55, %v1965_v40  ;;  %v1996_v60 = vadd.f32 %v2481_v58, %v1988_v57 }
 0x711   : > { %v1989_v59 = vmul.f32 %v2480_v54, %v1981_v56 }
 0x713   : > { %v1997_v61 = vadd.f32 %v2481_v58, %v1989_v59 }
 0x715   : > { %v1998_v62 = vpack.c.bf16 %v1997_v61, %v1996_v60 }
 0x717   : > { %2690 = vmatmul.mubr.msk.bf16.vlgmr.msra.gmra.mxu0 %vm767_vm2, %v1998_v62 }
 0x7d7   : > { %v2059_v4 = vpop.f32.mrf.mxu0 }
 0x7d8   : > { %v2060_v6 = vadd.f32 %v2482_v2, %v2059_v4 }
 0x7d9   : > { %v2691_v5 = vpop.f32.mrf.mxu0 }
 0x7da   : > { %v2066_v12 = vmax.f32 %v2060_v6, 0.0 }
 0x7db   : > { %v2062_v9 = vpop.f32.mrf.mxu0 }
 0x7dc   : > { %v2063_v10 = vadd.f32 %v2482_v2, %v2062_v9 }
 0x7dd   : > { %v2692_v11 = vpop.f32.mrf.mxu0 }
 0x7de   : > { %v2067_v28 = vmax.f32 %v2063_v10, 0.0 }
 0x7e0   : > { %v2068_v30 = vpack.c.bf16 %v2067_v28, %v2066_v12 }
 0x7e2   : > { %2702 = vmatmul.mubr.msk.bf16.vlgmr.msra.gmra.mxu1 %vm2108_vm7, %v2068_v30 }
 0x8a2   : > { %v2146_v14 = vpop.f32.mrf.mxu1 }
 0x8a3   : > { %v2147_v15 = vadd.f32 %v2486_v3, %v2146_v14 }
 0x8a4   : > { %v2703_v16 = vpop.f32.mrf.mxu1 }
 0x8a5   : > { %v2153_v17 = vadd.f32 %v2147_v15, %v1996_v60 }
 0x8a6   : > { %v2149_v18 = vpop.f32.mrf.mxu1 }
 0x8a7   : > { %v2150_v19 = vadd.f32 %v2486_v3, %v2149_v18  ;;  %v2157_v20 = vsel %vm767_vm2, %v2153_v17, 0.0 }
 0x8a8   : > { %2158 = vadd.xlane.f32.xlu1 %v2157_v20  ;;  %v2704_v13 = vpop.f32.mrf.mxu1 }
 0x8a9   : > { %v2154_v21 = vadd.f32 %v2150_v19, %v1997_v61 }
 0x8ab   : > { %v2160_v22 = vsel %vm767_vm2, %v2154_v21, 0.0 }
 0x8ac   : > { %2161 = vadd.xlane.f32.xlu0 %v2160_v22 }
 0x931   : > { %v2159_v23 = vpop.xlane.xlu1 %2158 }
 0x932   : > { %v2163_v24 = vmul.f32 0.03125, %v2159_v23 }
 0x934   : > { %v2165_v25 = vsub.f32 %v2153_v17, %v2163_v24 }
 0x935   : > { %v2162_v26 = vpop.xlane.xlu0 %2161 }
 0x936   : > { %v2164_v29 = vmul.f32 0.03125, %v2162_v26  ;;  %v2167_v27 = vmul.f32 %v2165_v25, %v2165_v25 }
 0x938   : > { %v2166_v31 = vsub.f32 %v2154_v21, %v2164_v29  ;;  %v2169_v33 = vsel %vm767_vm2, %v2167_v27, 0.0 }
 0x939   : > { %2170 = vadd.xlane.f32.xlu1 %v2169_v33 }
 0x93a   : > { %v2168_v32 = vmul.f32 %v2166_v31, %v2166_v31 }
 0x93c   : > { %v2172_v34 = vsel %vm767_vm2, %v2168_v32, 0.0 }
 0x93d   : > { %2173 = vadd.xlane.f32.xlu0 %v2172_v34 }
 0x9c2   : > { %v2171_v35 = vpop.xlane.xlu1 %2170 }
 0x9c3   : > { %v2175_v36 = vmul.f32 0.03125, %v2171_v35 }
 0x9c5   : > { %v2177_v37 = vadd.f32 1e-05, %v2175_v36 }
 0x9c6   : > { %v2174_v38 = vpop.xlane.xlu0 %2173 }
 0x9c7   : > { %2918 = vrsqrt.f32 %v2177_v37  ;;  %v2176_v39 = vmul.f32 0.03125, %v2174_v38 }
 0x9c9   : > { %v2178_v7 = vadd.f32 1e-05, %v2176_v39 }
 0x9cb   : > { %2920 = vrsqrt.f32 %v2178_v7 }
 0x9d4   : > { %v2919_v40 = vpop.eup %2918 }
 0x9d5   : > { %v2181_v42 = vmul.f32 %v2919_v40, %v2165_v25 }
 0x9d7   : > { %v2189_v43 = vmul.f32 %v2492_v41, %v2181_v42 }
 0x9d8   : > { %v2921_v44 = vpop.eup %2920 }
 0x9d9   : > { %v2197_v45 = vadd.f32 %v2493_v8, %v2189_v43  ;;  %v2182_v46 = vmul.f32 %v2921_v44, %v2166_v31 }
 0x9db   : > { %2199 = vst.msk [vmem:[#allocation2] sm:$0xff] %vm767_vm2, %v2197_v45  ;;  %v2190_v47 = vmul.f32 %v2492_v41, %v2182_v46  ;;  %2204 = sbr.rel (%p2494_p12) target bundleno = 2529 (0x9e1), region = 100 }
 0x9dd   : > { %v2198_v48 = vadd.f32 %v2493_v8, %v2190_v47 }
 0x9df   : > { %2200 = vst.msk [vmem:[#allocation2 + $0x8] sm:$0xff] %vm767_vm2, %v2198_v48 }
 0x9e0   : > { %2205 = vst.msk [vmem:[#allocation10] sm:$0xff] %vm767_vm2, %v2197_v45  ;;  %2206 = vst.msk [vmem:[#allocation10 + $0x8] sm:$0xff] %vm767_vm2, %v2198_v48 }
 0x9e1 PF: > { %p2740_p13 = scmp.eq.s32.totalorder %s3242_s19, 1  ;;  %s3136_s17 = smov [#allocation10]  }
 0x9e2   : > { %s2216_s23 = sshll.u32 %s3136_s17, 4  ;;  %s2217_s23 = int_to_ptr.vmem [resolvable:$true] %s2216_s23 }
 0x9e3   : > { %s3030_s22 = scalar_lea.vmem %s2217_s23, 256  ;;  %p3037_p11 = scmp.lt.s32.totalorder %s2217_s23, %s2217_s23 }
 0x9e4   : > { %p3031_p4 = scmp.ne.s32.totalorder %s2217_s23, %s3030_s22  ;;  %p3038_p1 = scmp.lt.s32.totalorder %s3030_s22, %s3030_s22 }
 0x9e6   : > { %p3032_p3 = pnand %p3031_p4, %p2740_p13  ;;  %p3039_p2 = por %p3038_p1, %p3037_p11 }
 0x9e8   : > { %p3033_p0 = pneg %p3032_p3 }
 0x9ea   : > { %p3040_p10 = pnand %p3039_p2, %p3033_p0 }
 0x9ec   : > { %3043 = shalt.err (!%p3040_p10)
}
 0x9ed   : > { %s3137_s16 = smov 128   ;;  %s3755_s28 = sld [smem:[#allocation32_spill]] }
 0x9f3   : > { %2718 = dma.vmem_to_hbm [thread:$0]  (%p2740_p13), %s2217_s23, 256, %s3755_s28, [#allocation5], %s3137_s16, %s3137_s16, %s3133_s24  }
 0x9f4   : > { %3091 = dma.done.wait (%p2740_p13), [#allocation5], 256  }
 0x9f5   : > { %3093 = vsyncadd (%p2740_p13), [#allocation5], 4294967040 }
 0x9f6 PF: > { %s27_s18 = sadd.s32 1, %s3116_s18   ;;  %s3756_s15 = sld [smem:[#allocation15_spill]] }
 0x9f7   : > { %p24_p5 = scmp.ge.s32.totalorder %s27_s18, 4   ;;  %s3757_s27 = sld [smem:[#allocation18_spill]] }
 0x9f8   : > { %s3758_s16 = sld [smem:[#allocation16_spill]]  ;;  %s3760_s29 = smov %s3100_s30 }
 0x9f9   : > { %s3759_s17 = sld [smem:[#allocation17_spill]]  ;;  %26 = sbr.rel (!%p24_p5) target bundleno = 20 (0x14), region = 172 }
 0x9fc   : > { %s3761_s30 = smov %s3756_s15 }
 0x9fd   : > { %s3762_s15 = smov %s3757_s27 }
 0x9fe   :  { %2232 = vsyncpa [#allocation4], 1 }
 0x9ff   :  { %2234 = vsyncpa [#allocation4 + $0x1], 1 }
 0xa00   :  { %2235 = vsyncpa [#allocation7], 1 }
 0xa01   :  { %2236 = vsyncpa [#allocation5], 1 }
 0xa02   :  { %2238 = vsyncpa [#allocation5 + $0x1], 1 }

</bundles_post_ra>
